<compile_context>
chip_gen: v6e
topology: v6e:2x2x1
jax: 0.10.0
libtpu: 0.0.40
codegen_flags: <defaults>
</compile_context>

<pallas_src>
import functools
import math

import jax
import jax.numpy as jnp
from jax.experimental import pallas as pl
from jax.experimental.pallas import tpu as pltpu

CP = 128          # padded channel width (lane-dense)


# ------------------------- Pallas kernels -------------------------

def matmul_bias_kernel(x_ref, w_ref, b_ref, o_ref):
    # Patch embedding row tile: (tm, K) bf16 @ (K, Cp) bf16 -> f32, + bias.
    o_ref[...] = (
        jnp.dot(x_ref[...], w_ref[...], preferred_element_type=jnp.float32)
        + b_ref[...]
    )


def matmul_bias(x, w, b):
    M, K = x.shape
    Cp = w.shape[1]
    tm = M                                     # largest tile that divides M
    for cand in (512, 256, 128):
        if M % cand == 0:
            tm = cand
            break
    return pl.pallas_call(
        matmul_bias_kernel,
        out_shape=jax.ShapeDtypeStruct((M, Cp), jnp.float32),
        grid=(M // tm,),
        in_specs=[
            pl.BlockSpec((tm, K), lambda i: (i, 0)),
            pl.BlockSpec((K, Cp), lambda i: (0, 0)),
            pl.BlockSpec((1, Cp), lambda i: (0, 0)),
        ],
        out_specs=pl.BlockSpec((tm, Cp), lambda i: (i, 0)),
        compiler_params=pltpu.CompilerParams(dimension_semantics=("parallel",)),
    )(x, w, b)


def conv3x3_stats_kernel(x_ref, w_ref, b_ref, y_ref, s1_ref, s2_ref, scr_ref,
                         *, H, W, dil):
    """3x3 dilated conv (+bias) for one batch element, flattened spatially.

    x_ref : (1, H*W, Cp) f32   activation, rows in (h, w) row-major order
    w_ref : (9, Cp, Cp)  bf16  per-tap weight matrices, tap index = kh*3 + kw
    y_ref : (1, H*W, Cp) f32   pre-BN conv output
    s1/s2 : (1, 1, Cp)   f32   per-tile sum / sum-of-squares (global BN)
    scr   : (2*pad+H*W, Cp) f32 VMEM staging buffer (zero halo for the taps)
    """
    n = H * W
    Cp = x_ref.shape[-1]
    pad = (scr_ref.shape[0] - n) // 2

    # statically enumerate in-bounds taps (others contribute exactly zero)
    taps = []
    for kh in range(3):
        dh = (kh - 1) * dil
        if abs(dh) >= H:
            continue
        for kw in range(3):
            dw = (kw - 1) * dil
            if abs(dw) >= W:
                continue
            taps.append((kh * 3 + kw, dh, dw))

    x = x_ref[0]                                           # (n, Cp) f32
    shifted = any(dh or dw for _, dh, dw in taps)
    if shifted:
        # Stage into a zero-padded scratch so every tap becomes a contiguous
        # static row slice (no im2col materialization in HBM).
        scr_ref[...] = jnp.zeros(scr_ref.shape, scr_ref.dtype)
        scr_ref[pad:pad + n, :] = x
    if any(dw for _, _, dw in taps):
        row = jax.lax.broadcasted_iota(jnp.int32, (n, 1), 0)
        col = row % W                                      # w coordinate / row

    acc = jnp.zeros((n, Cp), jnp.float32)
    for t, dh, dw in taps:
        if dh == 0 and dw == 0:
            tap = x
        else:
            off = pad + dh * W + dw
            tap = scr_ref[off:off + n, :]
            if dw != 0:
                # mask rows whose w + dw wrapped across an image row
                valid = (col + dw >= 0) & (col + dw < W)
                tap = jnp.where(valid, tap, 0.0)
        acc = acc + jnp.dot(tap.astype(jnp.bfloat16), w_ref[t],
                            preferred_element_type=jnp.float32)
    acc = acc + b_ref[...]

    y_ref[0] = acc
    s1_ref[0] = jnp.sum(acc, axis=0, keepdims=True)
    s2_ref[0] = jnp.sum(acc * acc, axis=0, keepdims=True)


def conv3x3_stats(x, w9, b, *, H, W, dil):
    Bn, n, Cp = x.shape
    pad = ((dil * (W + 1) + 7) // 8) * 8       # halo rows, sublane aligned
    rows = 2 * pad + n
    kern = functools.partial(conv3x3_stats_kernel, H=H, W=W, dil=dil)
    return pl.pallas_call(
        kern,
        out_shape=(jax.ShapeDtypeStruct((Bn, n, Cp), jnp.float32),
                   jax.ShapeDtypeStruct((Bn, 1, Cp), jnp.float32),
                   jax.ShapeDtypeStruct((Bn, 1, Cp), jnp.float32)),
        grid=(Bn,),
        in_specs=[
            pl.BlockSpec((1, n, Cp), lambda i: (i, 0, 0)),
            pl.BlockSpec((9, Cp, Cp), lambda i: (0, 0, 0)),
            pl.BlockSpec((1, Cp), lambda i: (0, 0)),
        ],
        out_specs=(pl.BlockSpec((1, n, Cp), lambda i: (i, 0, 0)),
                   pl.BlockSpec((1, 1, Cp), lambda i: (i, 0, 0)),
                   pl.BlockSpec((1, 1, Cp), lambda i: (i, 0, 0))),
        scratch_shapes=[pltpu.VMEM((rows, Cp), jnp.float32)],
        compiler_params=pltpu.CompilerParams(dimension_semantics=("parallel",)),
    )(x, w9, b)


def bn_relu_pool_kernel(y_ref, aff_ref, p_ref, o_ref):
    # Apply precomputed BN affine + ReLU, then pool without leaving VMEM:
    #   p_ref (npool, n): average-pooling matrix (avg_pool2d(4)), or when
    #   npool == 1, a plain global mean (adaptive_avg_pool2d(1)).
    z = jnp.maximum(y_ref[0] * aff_ref[0:1, :] + aff_ref[1:2, :], 0.0)
    if p_ref.shape[0] == 1:
        o_ref[0] = jnp.sum(z, axis=0, keepdims=True) * (1.0 / z.shape[0])
    else:
        o_ref[0] = jnp.dot(p_ref[...], z, preferred_element_type=jnp.float32)


def bn_relu_pool(y, aff, pmat):
    Bn, n, Cp = y.shape
    npool = pmat.shape[0]
    return pl.pallas_call(
        bn_relu_pool_kernel,
        out_shape=jax.ShapeDtypeStruct((Bn, npool, Cp), jnp.float32),
        grid=(Bn,),
        in_specs=[
            pl.BlockSpec((1, n, Cp), lambda i: (i, 0, 0)),
            pl.BlockSpec((2, Cp), lambda i: (0, 0)),
            pl.BlockSpec((npool, n), lambda i: (0, 0)),
        ],
        out_specs=pl.BlockSpec((1, npool, Cp), lambda i: (i, 0, 0)),
        compiler_params=pltpu.CompilerParams(dimension_semantics=("parallel",)),
    )(y, aff, pmat)


# ------------------------- JAX glue (layout / scalars only) ----------------

def extract_patches(x_nhwc, p):
    B, H, W, C = x_nhwc.shape
    Hp, Wp = H // p, W // p
    xp = x_nhwc.reshape(B, Hp, p, Wp, p, C).transpose(0, 1, 3, 2, 4, 5)
    return xp.reshape(B * Hp * Wp, p * p * C)


def pool_matrix(H, W, kh, kw):
    # (Ho*Wo, H*W) average-pooling matrix over row-major (h, w) pixels.
    Ho, Wo = H // kh, W // kw
    idx = jnp.arange(H * W)
    dest = (idx // W // kh) * Wo + (idx % W) // kw
    onehot = jnp.arange(Ho * Wo)[:, None] == dest[None, :]
    return onehot.astype(jnp.float32) / float(kh * kw)


def bn_affine(s, ss, count, gamma, beta, eps=1e-5):
    # Fold global batch statistics + BN params into a per-channel affine.
    mean = s / count
    var = jnp.maximum(ss / count - mean * mean, 0.0)   # biased var (torch BN fwd)
    scale = gamma * jax.lax.rsqrt(var + eps)
    shift = beta - mean * scale
    return jnp.stack([scale, shift], axis=0)           # (2, Cp) f32


# ------------------------- parameters -------------------------

def _pad_axis(a, size, axis):
    widths = [(0, 0)] * a.ndim
    widths[axis] = (0, size - a.shape[axis])
    return jnp.pad(a, widths)


def init_params(key, in_channels, embed_dim, patch_size):
    # Matches TokenGenerator._init_weights (fresh module, training-mode BN).
    k1, k2, k3 = jax.random.split(key, 3)
    fan_in = in_channels * patch_size * patch_size
    std_pe = math.sqrt(1.0 / fan_in) / 0.8796256610342398
    w_pe = (jax.random.truncated_normal(
        k1, -2.0, 2.0, (embed_dim, in_channels, patch_size, patch_size),
        jnp.float32) * std_pe)
    std_c = math.sqrt(2.0 / embed_dim)
    return dict(
        w_pe=w_pe, b_pe=jnp.zeros((embed_dim,), jnp.float32),
        w1=jax.random.normal(k2, (embed_dim, embed_dim, 3, 3), jnp.float32) * std_c,
        b1=jnp.zeros((embed_dim,), jnp.float32),
        w2=jax.random.normal(k3, (embed_dim, embed_dim, 3, 3), jnp.float32) * std_c,
        b2=jnp.zeros((embed_dim,), jnp.float32),
        g1=jnp.ones((embed_dim,), jnp.float32),
        be1=jnp.zeros((embed_dim,), jnp.float32),
        g2=jnp.ones((embed_dim,), jnp.float32),
        be2=jnp.zeros((embed_dim,), jnp.float32),
    )


def prepare_params(params, cp=CP):
    # One-time weight repacking (hoisted out of the forward pass):
    # channel dims zero-padded to cp=128 (lane-dense), matmul operands bf16.
    C, Cin, p, _ = params["w_pe"].shape
    w_pe = jnp.transpose(params["w_pe"], (2, 3, 1, 0)).reshape(p * p * Cin, C)
    w_pe = _pad_axis(w_pe, cp, 1).astype(jnp.bfloat16)

    def taps(w):                                 # (O, I, 3, 3) -> (9, cp, cp)
        w9 = jnp.transpose(w, (2, 3, 1, 0)).reshape(9, C, C)
        return _pad_axis(_pad_axis(w9, cp, 1), cp, 2).astype(jnp.bfloat16)

    def vec(v):
        return _pad_axis(v, cp, 0).astype(jnp.float32)

    return dict(
        w_pe=w_pe, b_pe=vec(params["b_pe"]).reshape(1, cp),
        w1=taps(params["w1"]), b1=vec(params["b1"]).reshape(1, cp),
        w2=taps(params["w2"]), b2=vec(params["b2"]).reshape(1, cp),
        g1=vec(params["g1"]), be1=vec(params["be1"]),
        g2=vec(params["g2"]), be2=vec(params["be2"]),
    )


# ------------------------- forward (Pallas path) -------------------------

@functools.partial(jax.jit, static_argnames=("patch_size", "C"))
def token_generator(prep, x_nchw, *, patch_size, C):
    B, Cin, H, W = x_nchw.shape
    Cp = prep["w_pe"].shape[1]
    Hp, Wp = H // patch_size, W // patch_size

    # --- patch_embed (stride==kernel conv) as a row-tiled Pallas matmul ---
    x_nhwc = jnp.transpose(x_nchw, (0, 2, 3, 1))
    x_col = extract_patches(x_nhwc, patch_size)              # (B*Hp*Wp, p*p*Cin)
    y0 = matmul_bias(x_col.astype(jnp.bfloat16), prep["w_pe"], prep["b_pe"])
    t1 = y0.reshape(B, Hp * Wp, Cp)                          # tokens_stage1 (padded C)

    # --- stage1: conv3x3 (d=1) + global BN + ReLU + fused avg_pool2d(4) ---
    y1, s1, ss1 = conv3x3_stats(t1, prep["w1"], prep["b1"], H=Hp, W=Wp, dil=1)
    aff1 = bn_affine(jnp.sum(s1, axis=(0, 1)), jnp.sum(ss1, axis=(0, 1)),
                     B * Hp * Wp, prep["g1"], prep["be1"])
    Ho, Wo = Hp // 4, Wp // 4
    t2 = bn_relu_pool(y1, aff1, pool_matrix(Hp, Wp, 4, 4))   # (B, Ho*Wo, Cp)

    # --- stage2: conv3x3 (d=4) + global BN + ReLU + fused global avg pool ---
    y2, s2, ss2 = conv3x3_stats(t2, prep["w2"], prep["b2"], H=Ho, W=Wo, dil=4)
    aff2 = bn_affine(jnp.sum(s2, axis=(0, 1)), jnp.sum(ss2, axis=(0, 1)),
                     B * Ho * Wo, prep["g2"], prep["be2"])
    t3 = bn_relu_pool(y2, aff2, pool_matrix(Ho, Wo, Ho, Wo))  # (B, 1, Cp)

    # TODO(synk): write the three token groups straight into one preallocated
    # (B, n_tok, Cp) buffer via out_specs offsets instead of concatenating.
    return jnp.concatenate([t1, t2, t3], axis=1)[:, :, :C]


# ------------------------- pure-JAX reference -------------------------

def _conv_nhwc(x, w_oihw, b, stride, dilation, padding):
    # bf16 operands / f32 accumulation, mirroring the Pallas kernels' MXU path.
    y = jax.lax.conv_general_dilated(
        x.astype(jnp.bfloat16),
        jnp.transpose(w_oihw, (2, 3, 1, 0)).astype(jnp.bfloat16),
        window_strides=(stride, stride),
        padding=((padding, padding), (padding, padding)),
        rhs_dilation=(dilation, dilation),
        dimension_numbers=("NHWC", "HWIO", "NHWC"),
        preferred_element_type=jnp.float32)
    return y + b.reshape(1, 1, 1, -1)


def _bn_relu(x, gamma, beta, eps=1e-5):
    mean = jnp.mean(x, axis=(0, 1, 2), keepdims=True)
    var = jnp.mean((x - mean) ** 2, axis=(0, 1, 2), keepdims=True)
    y = ((x - mean) * jax.lax.rsqrt(var + eps) * gamma.reshape(1, 1, 1, -1)
         + beta.reshape(1, 1, 1, -1))
    return jnp.maximum(y, 0.0)


def reference(params, x_nchw, patch_size):
    x = jnp.transpose(x_nchw, (0, 2, 3, 1))
    x = _conv_nhwc(x, params["w_pe"], params["b_pe"], patch_size, 1, 0)
    B, Hp, Wp, C = x.shape
    t1 = x.reshape(B, Hp * Wp, C)
    x = _bn_relu(_conv_nhwc(x, params["w1"], params["b1"], 1, 1, 1),
                 params["g1"], params["be1"])
    Ho, Wo = Hp // 4, Wp // 4
    x = x.reshape(B, Ho, 4, Wo, 4, C).mean(axis=(2, 4))
    t2 = x.reshape(B, Ho * Wo, C)
    x = _bn_relu(_conv_nhwc(x, params["w2"], params["b2"], 1, 4, 4),
                 params["g2"], params["be2"])
    t3 = x.mean(axis=(1, 2)).reshape(B, 1, C)
    return jnp.concatenate([t1, t2, t3], axis=1)


# ------------------------- main -------------------------

if __name__ == "__main__":
    B, Cin, H, W = 2, 3, 32, 32          # small image_size=32
    patch_size, embed_dim = 4, 32        # small patch_size=4, embed_dim=32

    key = jax.random.PRNGKey(0)
    kx, kp = jax.random.split(key)
    x = jax.random.normal(kx, (B, Cin, H, W), jnp.float32)
    params = init_params(kp, Cin, embed_dim, patch_size)
    prep = prepare_params(params)        # weight repacking hoisted out of fwd

    out = token_generator(prep, x, patch_size=patch_size, C=embed_dim)
    out = jax.block_until_ready(out)

    n_tok = ((H // patch_size) * (W // patch_size)
             + (H // patch_size // 4) * (W // patch_size // 4) + 1)
    assert out.shape == (B, n_tok, embed_dim), out.shape

    ref = reference(params, x, patch_size)
    err = float(jnp.max(jnp.abs(out - ref)))
    assert jnp.allclose(out, ref, rtol=1e-2, atol=1e-2), err

    print("KERNEL_OK")
</pallas_src>

<mosaic_0001>
module attributes {stable_mosaic.version = 11 : i64} {
  func.func @matmul_bias_kernel(%arg0: i32, %arg1: memref<128x48xbf16, #tpu.memory_space<vmem>>, %arg2: memref<48x128xbf16, #tpu.memory_space<vmem>>, %arg3: memref<1x128xf32, #tpu.memory_space<vmem>>, %arg4: memref<128x128xf32, #tpu.memory_space<vmem>>) attributes {dimension_semantics = [#tpu.dimension_semantics<parallel>], iteration_bounds = array<i64: 1>, scalar_prefetch = 0 : i64, scratch_operands = 0 : i64, tpu.core_type = #tpu.core_type<tc>, window_params = [{transform_indices = @transform_0, window_bounds = array<i64: 128, 48>}, {pipeline_mode = #tpu.pipeline_mode<synchronous>, transform_indices = @transform_1, window_bounds = array<i64: 48, 128>}, {pipeline_mode = #tpu.pipeline_mode<synchronous>, transform_indices = @transform_2, window_bounds = array<i64: 1, 128>}, {transform_indices = @transform_3, window_bounds = array<i64: 128, 128>}]} {
    %c0 = arith.constant 0 : index
    %c0_0 = arith.constant 0 : index
    %0 = vector.load %arg1[%c0, %c0_0] : memref<128x48xbf16, #tpu.memory_space<vmem>>, vector<128x48xbf16>
    %c0_1 = arith.constant 0 : index
    %c0_2 = arith.constant 0 : index
    %1 = vector.load %arg2[%c0_1, %c0_2] : memref<48x128xbf16, #tpu.memory_space<vmem>>, vector<48x128xbf16>
    %cst = arith.constant dense<0.000000e+00> : vector<128x128xf32>
    %2 = tpu.matmul %0, %1, %cst {dimension_numbers = #tpu.dot_dimension_numbers<[1], [0], [0], [1], [0, 0, 1, 1], [], []>} : vector<128x48xbf16>, vector<48x128xbf16>, vector<128x128xf32> -> vector<128x128xf32>
    %c0_3 = arith.constant 0 : index
    %c0_4 = arith.constant 0 : index
    %3 = vector.load %arg3[%c0_3, %c0_4] : memref<1x128xf32, #tpu.memory_space<vmem>>, vector<1x128xf32>
    %4 = vector.broadcast %3 : vector<1x128xf32> to vector<128x128xf32>
    %5 = arith.addf %2, %4 : vector<128x128xf32>
    %c0_5 = arith.constant 0 : index
    %c0_6 = arith.constant 0 : index
    %6 = vector.load %arg4[%c0_5, %c0_6] : memref<128x128xf32, #tpu.memory_space<vmem>>, vector<128x128xf32>
    tpu.vector_store %arg4[%c0_5, %c0_6], %5 {strides = array<i32>} : memref<128x128xf32, #tpu.memory_space<vmem>>, vector<128x128xf32>,
    return
  }
  func.func @transform_0(%arg0: i32) -> (i32, i32) {
    %c0_i32 = arith.constant 0 : i32
    %c0_i32_0 = arith.constant 0 : i32
    return %arg0, %c0_i32 : i32, i32
  }
  func.func @transform_1(%arg0: i32) -> (i32, i32) {
    %c0_i32 = arith.constant 0 : i32
    %c0_i32_0 = arith.constant 0 : i32
    %c0_i32_1 = arith.constant 0 : i32
    return %c0_i32, %c0_i32_0 : i32, i32
  }
  func.func @transform_2(%arg0: i32) -> (i32, i32) {
    %c0_i32 = arith.constant 0 : i32
    %c0_i32_0 = arith.constant 0 : i32
    %c0_i32_1 = arith.constant 0 : i32
    return %c0_i32, %c0_i32_0 : i32, i32
  }
  func.func @transform_3(%arg0: i32) -> (i32, i32) {
    %c0_i32 = arith.constant 0 : i32
    %c0_i32_0 = arith.constant 0 : i32
    return %arg0, %c0_i32 : i32, i32
  }
}

module attributes {stable_mosaic.version = 11 : i64} {
  func.func @conv3x3_stats_kernel(%arg0: i32, %arg1: memref<1x64x128xf32, #tpu.memory_space<vmem>>, %arg2: memref<9x128x128xbf16, #tpu.memory_space<vmem>>, %arg3: memref<1x128xf32, #tpu.memory_space<vmem>>, %arg4: memref<1x64x128xf32, #tpu.memory_space<vmem>>, %arg5: memref<1x1x128xf32, #tpu.memory_space<vmem>>, %arg6: memref<1x1x128xf32, #tpu.memory_space<vmem>>, %arg7: memref<96x128xf32, #tpu.memory_space<vmem>>) attributes {dimension_semantics = [#tpu.dimension_semantics<parallel>], iteration_bounds = array<i64: 2>, scalar_prefetch = 0 : i64, scratch_operands = 1 : i64, tpu.core_type = #tpu.core_type<tc>, window_params = [{transform_indices = @transform_0, window_bounds = array<i64: 1, 64, 128>}, {pipeline_mode = #tpu.pipeline_mode<synchronous>, transform_indices = @transform_1, window_bounds = array<i64: 9, 128, 128>}, {pipeline_mode = #tpu.pipeline_mode<synchronous>, transform_indices = @transform_2, window_bounds = array<i64: 1, 128>}, {transform_indices = @transform_3, window_bounds = array<i64: 1, 64, 128>}, {transform_indices = @transform_4, window_bounds = array<i64: 1, 1, 128>}, {transform_indices = @transform_5, window_bounds = array<i64: 1, 1, 128>}]} {
    %c0 = arith.constant 0 : index
    %c0_0 = arith.constant 0 : index
    %c0_1 = arith.constant 0 : index
    %0 = vector.load %arg1[%c0, %c0_0, %c0_1] : memref<1x64x128xf32, #tpu.memory_space<vmem>>, vector<1x64x128xf32>
    %1 = vector.shape_cast %0 : vector<1x64x128xf32> to vector<64x128xf32>
    %cst = arith.constant 0.000000e+00 : f32
    %2 = vector.broadcast %cst : f32 to vector<96x128xf32>
    %c0_2 = arith.constant 0 : index
    %c0_3 = arith.constant 0 : index
    %3 = vector.load %arg7[%c0_2, %c0_3] : memref<96x128xf32, #tpu.memory_space<vmem>>, vector<96x128xf32>
    tpu.vector_store %arg7[%c0_2, %c0_3], %2 {strides = array<i32>} : memref<96x128xf32, #tpu.memory_space<vmem>>, vector<96x128xf32>,
    %c16 = arith.constant 16 : index
    %c0_4 = arith.constant 0 : index
    %4 = vector.load %arg7[%c16, %c0_4] : memref<96x128xf32, #tpu.memory_space<vmem>>, vector<64x128xf32>
    tpu.vector_store %arg7[%c16, %c0_4], %1 {strides = array<i32>} : memref<96x128xf32, #tpu.memory_space<vmem>>, vector<64x128xf32>,
    %5 = tpu.iota {dimensions = array<i32: 0>} : vector<64x1xi32>
    %c8_i32 = arith.constant 8 : i32
    %c0_i32 = arith.constant 0 : i32
    %6 = arith.cmpi eq, %c8_i32, %c0_i32 : i32
    %c1_i32 = arith.constant 1 : i32
    %7 = arith.select %6, %c1_i32, %c8_i32 : i32
    %8 = vector.broadcast %7 : i32 to vector<64x1xi32>
    %9 = arith.remsi %5, %8 : vector<64x1xi32>
    %c0_i32_5 = arith.constant 0 : i32
    %10 = vector.broadcast %c0_i32_5 : i32 to vector<64x1xi32>
    %11 = arith.cmpi ne, %9, %10 : vector<64x1xi32>
    %c0_i32_6 = arith.constant 0 : i32
    %12 = vector.broadcast %c0_i32_6 : i32 to vector<64x1xi32>
    %13 = arith.cmpi slt, %9, %12 : vector<64x1xi32>
    %c0_i32_7 = arith.constant 0 : i32
    %14 = arith.cmpi slt, %7, %c0_i32_7 : i32
    %15 = vector.broadcast %14 : i1 to vector<64x1xi1>
    %16 = vector.broadcast %15 : vector<64x1xi1> to vector<64x1xi1>
    %17 = arith.xori %13, %16 : vector<64x1xi1>
    %18 = arith.andi %17, %11 : vector<64x1xi1>
    %19 = vector.broadcast %7 : i32 to vector<64x1xi32>
    %20 = arith.addi %9, %19 : vector<64x1xi32>
    %21 = arith.select %18, %20, %9 : vector<64x1xi1>, vector<64x1xi32>
    %cst_8 = arith.constant 0.000000e+00 : f32
    %22 = vector.broadcast %cst_8 : f32 to vector<64x128xf32>
    %c7 = arith.constant 7 : index
    %c0_9 = arith.constant 0 : index
    %23 = vector.load %arg7[%c7, %c0_9] : memref<96x128xf32, #tpu.memory_space<vmem>>, vector<64x128xf32>
    %c-1_i32 = arith.constant -1 : i32
    %24 = vector.broadcast %c-1_i32 : i32 to vector<64x1xi32>
    %25 = arith.addi %21, %24 : vector<64x1xi32>
    %c0_i32_10 = arith.constant 0 : i32
    %26 = vector.broadcast %c0_i32_10 : i32 to vector<64x1xi32>
    %27 = arith.cmpi sge, %25, %26 : vector<64x1xi32>
    %c-1_i32_11 = arith.constant -1 : i32
    %28 = vector.broadcast %c-1_i32_11 : i32 to vector<64x1xi32>
    %29 = arith.addi %21, %28 : vector<64x1xi32>
    %c8_i32_12 = arith.constant 8 : i32
    %30 = vector.broadcast %c8_i32_12 : i32 to vector<64x1xi32>
    %31 = arith.cmpi slt, %29, %30 : vector<64x1xi32>
    %32 = arith.andi %27, %31 : vector<64x1xi1>
    %cst_13 = arith.constant 0.000000e+00 : f32
    %33 = vector.shape_cast %32 : vector<64x1xi1> to vector<64x1xi1>
    %34 = vector.broadcast %33 : vector<64x1xi1> to vector<64x128xi1>
    %35 = vector.broadcast %cst_13 : f32 to vector<64x128xf32>
    %36 = arith.select %34, %23, %35 : vector<64x128xi1>, vector<64x128xf32>
    %37 = arith.truncf %36 : vector<64x128xf32> to vector<64x128xbf16>
    %c0_14 = arith.constant 0 : index
    %c0_15 = arith.constant 0 : index
    %c0_16 = arith.constant 0 : index
    %38 = vector.load %arg2[%c0_14, %c0_15, %c0_16] : memref<9x128x128xbf16, #tpu.memory_space<vmem>>, vector<1x128x128xbf16>
    %39 = vector.shape_cast %38 : vector<1x128x128xbf16> to vector<128x128xbf16>
    %cst_17 = arith.constant dense<0.000000e+00> : vector<64x128xf32>
    %40 = tpu.matmul %37, %39, %cst_17 {dimension_numbers = #tpu.dot_dimension_numbers<[1], [0], [0], [1], [0, 0, 1, 1], [], []>} : vector<64x128xbf16>, vector<128x128xbf16>, vector<64x128xf32> -> vector<64x128xf32>
    %41 = arith.addf %22, %40 : vector<64x128xf32>
    %c8 = arith.constant 8 : index
    %c0_18 = arith.constant 0 : index
    %42 = vector.load %arg7[%c8, %c0_18] : memref<96x128xf32, #tpu.memory_space<vmem>>, vector<64x128xf32>
    %43 = arith.truncf %42 : vector<64x128xf32> to vector<64x128xbf16>
    %c1 = arith.constant 1 : index
    %c0_19 = arith.constant 0 : index
    %c0_20 = arith.constant 0 : index
    %44 = vector.load %arg2[%c1, %c0_19, %c0_20] : memref<9x128x128xbf16, #tpu.memory_space<vmem>>, vector<1x128x128xbf16>
    %45 = vector.shape_cast %44 : vector<1x128x128xbf16> to vector<128x128xbf16>
    %cst_21 = arith.constant dense<0.000000e+00> : vector<64x128xf32>
    %46 = tpu.matmul %43, %45, %cst_21 {dimension_numbers = #tpu.dot_dimension_numbers<[1], [0], [0], [1], [0, 0, 1, 1], [], []>} : vector<64x128xbf16>, vector<128x128xbf16>, vector<64x128xf32> -> vector<64x128xf32>
    %47 = arith.addf %41, %46 : vector<64x128xf32>
    %c9 = arith.constant 9 : index
    %c0_22 = arith.constant 0 : index
    %48 = vector.load %arg7[%c9, %c0_22] : memref<96x128xf32, #tpu.memory_space<vmem>>, vector<64x128xf32>
    %c1_i32_23 = arith.constant 1 : i32
    %49 = vector.broadcast %c1_i32_23 : i32 to vector<64x1xi32>
    %50 = arith.addi %21, %49 : vector<64x1xi32>
    %c0_i32_24 = arith.constant 0 : i32
    %51 = vector.broadcast %c0_i32_24 : i32 to vector<64x1xi32>
    %52 = arith.cmpi sge, %50, %51 : vector<64x1xi32>
    %c1_i32_25 = arith.constant 1 : i32
    %53 = vector.broadcast %c1_i32_25 : i32 to vector<64x1xi32>
    %54 = arith.addi %21, %53 : vector<64x1xi32>
    %c8_i32_26 = arith.constant 8 : i32
    %55 = vector.broadcast %c8_i32_26 : i32 to vector<64x1xi32>
    %56 = arith.cmpi slt, %54, %55 : vector<64x1xi32>
    %57 = arith.andi %52, %56 : vector<64x1xi1>
    %cst_27 = arith.constant 0.000000e+00 : f32
    %58 = vector.shape_cast %57 : vector<64x1xi1> to vector<64x1xi1>
    %59 = vector.broadcast %58 : vector<64x1xi1> to vector<64x128xi1>
    %60 = vector.broadcast %cst_27 : f32 to vector<64x128xf32>
    %61 = arith.select %59, %48, %60 : vector<64x128xi1>, vector<64x128xf32>
    %62 = arith.truncf %61 : vector<64x128xf32> to vector<64x128xbf16>
    %c2 = arith.constant 2 : index
    %c0_28 = arith.constant 0 : index
    %c0_29 = arith.constant 0 : index
    %63 = vector.load %arg2[%c2, %c0_28, %c0_29] : memref<9x128x128xbf16, #tpu.memory_space<vmem>>, vector<1x128x128xbf16>
    %64 = vector.shape_cast %63 : vector<1x128x128xbf16> to vector<128x128xbf16>
    %cst_30 = arith.constant dense<0.000000e+00> : vector<64x128xf32>
    %65 = tpu.matmul %62, %64, %cst_30 {dimension_numbers = #tpu.dot_dimension_numbers<[1], [0], [0], [1], [0, 0, 1, 1], [], []>} : vector<64x128xbf16>, vector<128x128xbf16>, vector<64x128xf32> -> vector<64x128xf32>
    %66 = arith.addf %47, %65 : vector<64x128xf32>
    %c15 = arith.constant 15 : index
    %c0_31 = arith.constant 0 : index
    %67 = vector.load %arg7[%c15, %c0_31] : memref<96x128xf32, #tpu.memory_space<vmem>>, vector<64x128xf32>
    %c-1_i32_32 = arith.constant -1 : i32
    %68 = vector.broadcast %c-1_i32_32 : i32 to vector<64x1xi32>
    %69 = arith.addi %21, %68 : vector<64x1xi32>
    %c0_i32_33 = arith.constant 0 : i32
    %70 = vector.broadcast %c0_i32_33 : i32 to vector<64x1xi32>
    %71 = arith.cmpi sge, %69, %70 : vector<64x1xi32>
    %c-1_i32_34 = arith.constant -1 : i32
    %72 = vector.broadcast %c-1_i32_34 : i32 to vector<64x1xi32>
    %73 = arith.addi %21, %72 : vector<64x1xi32>
    %c8_i32_35 = arith.constant 8 : i32
    %74 = vector.broadcast %c8_i32_35 : i32 to vector<64x1xi32>
    %75 = arith.cmpi slt, %73, %74 : vector<64x1xi32>
    %76 = arith.andi %71, %75 : vector<64x1xi1>
    %cst_36 = arith.constant 0.000000e+00 : f32
    %77 = vector.shape_cast %76 : vector<64x1xi1> to vector<64x1xi1>
    %78 = vector.broadcast %77 : vector<64x1xi1> to vector<64x128xi1>
    %79 = vector.broadcast %cst_36 : f32 to vector<64x128xf32>
    %80 = arith.select %78, %67, %79 : vector<64x128xi1>, vector<64x128xf32>
    %81 = arith.truncf %80 : vector<64x128xf32> to vector<64x128xbf16>
    %c3 = arith.constant 3 : index
    %c0_37 = arith.constant 0 : index
    %c0_38 = arith.constant 0 : index
    %82 = vector.load %arg2[%c3, %c0_37, %c0_38] : memref<9x128x128xbf16, #tpu.memory_space<vmem>>, vector<1x128x128xbf16>
    %83 = vector.shape_cast %82 : vector<1x128x128xbf16> to vector<128x128xbf16>
    %cst_39 = arith.constant dense<0.000000e+00> : vector<64x128xf32>
    %84 = tpu.matmul %81, %83, %cst_39 {dimension_numbers = #tpu.dot_dimension_numbers<[1], [0], [0], [1], [0, 0, 1, 1], [], []>} : vector<64x128xbf16>, vector<128x128xbf16>, vector<64x128xf32> -> vector<64x128xf32>
    %85 = arith.addf %66, %84 : vector<64x128xf32>
    %86 = arith.truncf %1 : vector<64x128xf32> to vector<64x128xbf16>
    %c4 = arith.constant 4 : index
    %c0_40 = arith.constant 0 : index
    %c0_41 = arith.constant 0 : index
    %87 = vector.load %arg2[%c4, %c0_40, %c0_41] : memref<9x128x128xbf16, #tpu.memory_space<vmem>>, vector<1x128x128xbf16>
    %88 = vector.shape_cast %87 : vector<1x128x128xbf16> to vector<128x128xbf16>
    %cst_42 = arith.constant dense<0.000000e+00> : vector<64x128xf32>
    %89 = tpu.matmul %86, %88, %cst_42 {dimension_numbers = #tpu.dot_dimension_numbers<[1], [0], [0], [1], [0, 0, 1, 1], [], []>} : vector<64x128xbf16>, vector<128x128xbf16>, vector<64x128xf32> -> vector<64x128xf32>
    %90 = arith.addf %85, %89 : vector<64x128xf32>
    %c17 = arith.constant 17 : index
    %c0_43 = arith.constant 0 : index
    %91 = vector.load %arg7[%c17, %c0_43] : memref<96x128xf32, #tpu.memory_space<vmem>>, vector<64x128xf32>
    %c1_i32_44 = arith.constant 1 : i32
    %92 = vector.broadcast %c1_i32_44 : i32 to vector<64x1xi32>
    %93 = arith.addi %21, %92 : vector<64x1xi32>
    %c0_i32_45 = arith.constant 0 : i32
    %94 = vector.broadcast %c0_i32_45 : i32 to vector<64x1xi32>
    %95 = arith.cmpi sge, %93, %94 : vector<64x1xi32>
    %c1_i32_46 = arith.constant 1 : i32
    %96 = vector.broadcast %c1_i32_46 : i32 to vector<64x1xi32>
    %97 = arith.addi %21, %96 : vector<64x1xi32>
    %c8_i32_47 = arith.constant 8 : i32
    %98 = vector.broadcast %c8_i32_47 : i32 to vector<64x1xi32>
    %99 = arith.cmpi slt, %97, %98 : vector<64x1xi32>
    %100 = arith.andi %95, %99 : vector<64x1xi1>
    %cst_48 = arith.constant 0.000000e+00 : f32
    %101 = vector.shape_cast %100 : vector<64x1xi1> to vector<64x1xi1>
    %102 = vector.broadcast %101 : vector<64x1xi1> to vector<64x128xi1>
    %103 = vector.broadcast %cst_48 : f32 to vector<64x128xf32>
    %104 = arith.select %102, %91, %103 : vector<64x128xi1>, vector<64x128xf32>
    %105 = arith.truncf %104 : vector<64x128xf32> to vector<64x128xbf16>
    %c5 = arith.constant 5 : index
    %c0_49 = arith.constant 0 : index
    %c0_50 = arith.constant 0 : index
    %106 = vector.load %arg2[%c5, %c0_49, %c0_50] : memref<9x128x128xbf16, #tpu.memory_space<vmem>>, vector<1x128x128xbf16>
    %107 = vector.shape_cast %106 : vector<1x128x128xbf16> to vector<128x128xbf16>
    %cst_51 = arith.constant dense<0.000000e+00> : vector<64x128xf32>
    %108 = tpu.matmul %105, %107, %cst_51 {dimension_numbers = #tpu.dot_dimension_numbers<[1], [0], [0], [1], [0, 0, 1, 1], [], []>} : vector<64x128xbf16>, vector<128x128xbf16>, vector<64x128xf32> -> vector<64x128xf32>
    %109 = arith.addf %90, %108 : vector<64x128xf32>
    %c23 = arith.constant 23 : index
    %c0_52 = arith.constant 0 : index
    %110 = vector.load %arg7[%c23, %c0_52] : memref<96x128xf32, #tpu.memory_space<vmem>>, vector<64x128xf32>
    %c-1_i32_53 = arith.constant -1 : i32
    %111 = vector.broadcast %c-1_i32_53 : i32 to vector<64x1xi32>
    %112 = arith.addi %21, %111 : vector<64x1xi32>
    %c0_i32_54 = arith.constant 0 : i32
    %113 = vector.broadcast %c0_i32_54 : i32 to vector<64x1xi32>
    %114 = arith.cmpi sge, %112, %113 : vector<64x1xi32>
    %c-1_i32_55 = arith.constant -1 : i32
    %115 = vector.broadcast %c-1_i32_55 : i32 to vector<64x1xi32>
    %116 = arith.addi %21, %115 : vector<64x1xi32>
    %c8_i32_56 = arith.constant 8 : i32
    %117 = vector.broadcast %c8_i32_56 : i32 to vector<64x1xi32>
    %118 = arith.cmpi slt, %116, %117 : vector<64x1xi32>
    %119 = arith.andi %114, %118 : vector<64x1xi1>
    %cst_57 = arith.constant 0.000000e+00 : f32
    %120 = vector.shape_cast %119 : vector<64x1xi1> to vector<64x1xi1>
    %121 = vector.broadcast %120 : vector<64x1xi1> to vector<64x128xi1>
    %122 = vector.broadcast %cst_57 : f32 to vector<64x128xf32>
    %123 = arith.select %121, %110, %122 : vector<64x128xi1>, vector<64x128xf32>
    %124 = arith.truncf %123 : vector<64x128xf32> to vector<64x128xbf16>
    %c6 = arith.constant 6 : index
    %c0_58 = arith.constant 0 : index
    %c0_59 = arith.constant 0 : index
    %125 = vector.load %arg2[%c6, %c0_58, %c0_59] : memref<9x128x128xbf16, #tpu.memory_space<vmem>>, vector<1x128x128xbf16>
    %126 = vector.shape_cast %125 : vector<1x128x128xbf16> to vector<128x128xbf16>
    %cst_60 = arith.constant dense<0.000000e+00> : vector<64x128xf32>
    %127 = tpu.matmul %124, %126, %cst_60 {dimension_numbers = #tpu.dot_dimension_numbers<[1], [0], [0], [1], [0, 0, 1, 1], [], []>} : vector<64x128xbf16>, vector<128x128xbf16>, vector<64x128xf32> -> vector<64x128xf32>
    %128 = arith.addf %109, %127 : vector<64x128xf32>
    %c24 = arith.constant 24 : index
    %c0_61 = arith.constant 0 : index
    %129 = vector.load %arg7[%c24, %c0_61] : memref<96x128xf32, #tpu.memory_space<vmem>>, vector<64x128xf32>
    %130 = arith.truncf %129 : vector<64x128xf32> to vector<64x128xbf16>
    %c7_62 = arith.constant 7 : index
    %c0_63 = arith.constant 0 : index
    %c0_64 = arith.constant 0 : index
    %131 = vector.load %arg2[%c7_62, %c0_63, %c0_64] : memref<9x128x128xbf16, #tpu.memory_space<vmem>>, vector<1x128x128xbf16>
    %132 = vector.shape_cast %131 : vector<1x128x128xbf16> to vector<128x128xbf16>
    %cst_65 = arith.constant dense<0.000000e+00> : vector<64x128xf32>
    %133 = tpu.matmul %130, %132, %cst_65 {dimension_numbers = #tpu.dot_dimension_numbers<[1], [0], [0], [1], [0, 0, 1, 1], [], []>} : vector<64x128xbf16>, vector<128x128xbf16>, vector<64x128xf32> -> vector<64x128xf32>
    %134 = arith.addf %128, %133 : vector<64x128xf32>
    %c25 = arith.constant 25 : index
    %c0_66 = arith.constant 0 : index
    %135 = vector.load %arg7[%c25, %c0_66] : memref<96x128xf32, #tpu.memory_space<vmem>>, vector<64x128xf32>
    %c1_i32_67 = arith.constant 1 : i32
    %136 = vector.broadcast %c1_i32_67 : i32 to vector<64x1xi32>
    %137 = arith.addi %21, %136 : vector<64x1xi32>
    %c0_i32_68 = arith.constant 0 : i32
    %138 = vector.broadcast %c0_i32_68 : i32 to vector<64x1xi32>
    %139 = arith.cmpi sge, %137, %138 : vector<64x1xi32>
    %c1_i32_69 = arith.constant 1 : i32
    %140 = vector.broadcast %c1_i32_69 : i32 to vector<64x1xi32>
    %141 = arith.addi %21, %140 : vector<64x1xi32>
    %c8_i32_70 = arith.constant 8 : i32
    %142 = vector.broadcast %c8_i32_70 : i32 to vector<64x1xi32>
    %143 = arith.cmpi slt, %141, %142 : vector<64x1xi32>
    %144 = arith.andi %139, %143 : vector<64x1xi1>
    %cst_71 = arith.constant 0.000000e+00 : f32
    %145 = vector.shape_cast %144 : vector<64x1xi1> to vector<64x1xi1>
    %146 = vector.broadcast %145 : vector<64x1xi1> to vector<64x128xi1>
    %147 = vector.broadcast %cst_71 : f32 to vector<64x128xf32>
    %148 = arith.select %146, %135, %147 : vector<64x128xi1>, vector<64x128xf32>
    %149 = arith.truncf %148 : vector<64x128xf32> to vector<64x128xbf16>
    %c8_72 = arith.constant 8 : index
    %c0_73 = arith.constant 0 : index
    %c0_74 = arith.constant 0 : index
    %150 = vector.load %arg2[%c8_72, %c0_73, %c0_74] : memref<9x128x128xbf16, #tpu.memory_space<vmem>>, vector<1x128x128xbf16>
    %151 = vector.shape_cast %150 : vector<1x128x128xbf16> to vector<128x128xbf16>
    %cst_75 = arith.constant dense<0.000000e+00> : vector<64x128xf32>
    %152 = tpu.matmul %149, %151, %cst_75 {dimension_numbers = #tpu.dot_dimension_numbers<[1], [0], [0], [1], [0, 0, 1, 1], [], []>} : vector<64x128xbf16>, vector<128x128xbf16>, vector<64x128xf32> -> vector<64x128xf32>
    %153 = arith.addf %134, %152 : vector<64x128xf32>
    %c0_76 = arith.constant 0 : index
    %c0_77 = arith.constant 0 : index
    %154 = vector.load %arg3[%c0_76, %c0_77] : memref<1x128xf32, #tpu.memory_space<vmem>>, vector<1x128xf32>
    %155 = vector.broadcast %154 : vector<1x128xf32> to vector<64x128xf32>
    %156 = arith.addf %153, %155 : vector<64x128xf32>
    %c0_78 = arith.constant 0 : index
    %c0_79 = arith.constant 0 : index
    %c0_80 = arith.constant 0 : index
    %157 = vector.load %arg4[%c0_78, %c0_79, %c0_80] : memref<1x64x128xf32, #tpu.memory_space<vmem>>, vector<1x64x128xf32>
    %158 = vector.shape_cast %157 : vector<1x64x128xf32> to vector<64x128xf32>
    %159 = vector.shape_cast %156 : vector<64x128xf32> to vector<1x64x128xf32>
    tpu.vector_store %arg4[%c0_78, %c0_79, %c0_80], %159 {strides = array<i32>} : memref<1x64x128xf32, #tpu.memory_space<vmem>>, vector<1x64x128xf32>,
    %cst_81 = arith.constant dense<0.000000e+00> : vector<128xf32>
    %160 = vector.multi_reduction <add>, %156, %cst_81 [0] : vector<64x128xf32> to vector<128xf32>
    %161 = vector.shape_cast %160 : vector<128xf32> to vector<1x128xf32>
    %c0_82 = arith.constant 0 : index
    %c0_83 = arith.constant 0 : index
    %c0_84 = arith.constant 0 : index
    %162 = vector.load %arg5[%c0_82, %c0_83, %c0_84] : memref<1x1x128xf32, #tpu.memory_space<vmem>>, vector<1x1x128xf32>
    %163 = vector.shape_cast %162 : vector<1x1x128xf32> to vector<1x128xf32>
    %164 = vector.shape_cast %161 : vector<1x128xf32> to vector<1x1x128xf32>
    tpu.vector_store %arg5[%c0_82, %c0_83, %c0_84], %164 {strides = array<i32>} : memref<1x1x128xf32, #tpu.memory_space<vmem>>, vector<1x1x128xf32>,
    %165 = arith.mulf %156, %156 : vector<64x128xf32>
    %cst_85 = arith.constant dense<0.000000e+00> : vector<128xf32>
    %166 = vector.multi_reduction <add>, %165, %cst_85 [0] : vector<64x128xf32> to vector<128xf32>
    %167 = vector.shape_cast %166 : vector<128xf32> to vector<1x128xf32>
    %c0_86 = arith.constant 0 : index
    %c0_87 = arith.constant 0 : index
    %c0_88 = arith.constant 0 : index
    %168 = vector.load %arg6[%c0_86, %c0_87, %c0_88] : memref<1x1x128xf32, #tpu.memory_space<vmem>>, vector<1x1x128xf32>
    %169 = vector.shape_cast %168 : vector<1x1x128xf32> to vector<1x128xf32>
    %170 = vector.shape_cast %167 : vector<1x128xf32> to vector<1x1x128xf32>
    tpu.vector_store %arg6[%c0_86, %c0_87, %c0_88], %170 {strides = array<i32>} : memref<1x1x128xf32, #tpu.memory_space<vmem>>, vector<1x1x128xf32>,
    return
  }
  func.func @transform_0(%arg0: i32) -> (i32, i32, i32) {
    %c0_i32 = arith.constant 0 : i32
    %c0_i32_0 = arith.constant 0 : i32
    %c0_i32_1 = arith.constant 0 : i32
    return %arg0, %c0_i32, %c0_i32_0 : i32, i32, i32
  }
  func.func @transform_1(%arg0: i32) -> (i32, i32, i32) {
    %c0_i32 = arith.constant 0 : i32
    %c0_i32_0 = arith.constant 0 : i32
    %c0_i32_1 = arith.constant 0 : i32
    %c0_i32_2 = arith.constant 0 : i32
    return %c0_i32, %c0_i32_0, %c0_i32_1 : i32, i32, i32
  }
  func.func @transform_2(%arg0: i32) -> (i32, i32) {
    %c0_i32 = arith.constant 0 : i32
    %c0_i32_0 = arith.constant 0 : i32
    %c0_i32_1 = arith.constant 0 : i32
    return %c0_i32, %c0_i32_0 : i32, i32
  }
  func.func @transform_3(%arg0: i32) -> (i32, i32, i32) {
    %c0_i32 = arith.constant 0 : i32
    %c0_i32_0 = arith.constant 0 : i32
    %c0_i32_1 = arith.constant 0 : i32
    return %arg0, %c0_i32, %c0_i32_0 : i32, i32, i32
  }
  func.func @transform_4(%arg0: i32) -> (i32, i32, i32) {
    %c0_i32 = arith.constant 0 : i32
    %c0_i32_0 = arith.constant 0 : i32
    %c0_i32_1 = arith.constant 0 : i32
    return %arg0, %c0_i32, %c0_i32_0 : i32, i32, i32
  }
  func.func @transform_5(%arg0: i32) -> (i32, i32, i32) {
    %c0_i32 = arith.constant 0 : i32
    %c0_i32_0 = arith.constant 0 : i32
    %c0_i32_1 = arith.constant 0 : i32
    return %arg0, %c0_i32, %c0_i32_0 : i32, i32, i32
  }
}

module attributes {stable_mosaic.version = 11 : i64} {
  func.func @conv3x3_stats_kernel(%arg0: i32, %arg1: memref<1x4x128xf32, #tpu.memory_space<vmem>>, %arg2: memref<9x128x128xbf16, #tpu.memory_space<vmem>>, %arg3: memref<1x128xf32, #tpu.memory_space<vmem>>, %arg4: memref<1x4x128xf32, #tpu.memory_space<vmem>>, %arg5: memref<1x1x128xf32, #tpu.memory_space<vmem>>, %arg6: memref<1x1x128xf32, #tpu.memory_space<vmem>>, %arg7: memref<36x128xf32, #tpu.memory_space<vmem>>) attributes {dimension_semantics = [#tpu.dimension_semantics<parallel>], iteration_bounds = array<i64: 2>, scalar_prefetch = 0 : i64, scratch_operands = 1 : i64, tpu.core_type = #tpu.core_type<tc>, window_params = [{transform_indices = @transform_0, window_bounds = array<i64: 1, 4, 128>}, {pipeline_mode = #tpu.pipeline_mode<synchronous>, transform_indices = @transform_1, window_bounds = array<i64: 9, 128, 128>}, {pipeline_mode = #tpu.pipeline_mode<synchronous>, transform_indices = @transform_2, window_bounds = array<i64: 1, 128>}, {transform_indices = @transform_3, window_bounds = array<i64: 1, 4, 128>}, {transform_indices = @transform_4, window_bounds = array<i64: 1, 1, 128>}, {transform_indices = @transform_5, window_bounds = array<i64: 1, 1, 128>}]} {
    %c0 = arith.constant 0 : index
    %c0_0 = arith.constant 0 : index
    %c0_1 = arith.constant 0 : index
    %0 = vector.load %arg1[%c0, %c0_0, %c0_1] : memref<1x4x128xf32, #tpu.memory_space<vmem>>, vector<1x4x128xf32>
    %1 = vector.shape_cast %0 : vector<1x4x128xf32> to vector<4x128xf32>
    %cst = arith.constant 0.000000e+00 : f32
    %2 = vector.broadcast %cst : f32 to vector<4x128xf32>
    %3 = arith.truncf %1 : vector<4x128xf32> to vector<4x128xbf16>
    %c4 = arith.constant 4 : index
    %c0_2 = arith.constant 0 : index
    %c0_3 = arith.constant 0 : index
    %4 = vector.load %arg2[%c4, %c0_2, %c0_3] : memref<9x128x128xbf16, #tpu.memory_space<vmem>>, vector<1x128x128xbf16>
    %5 = vector.shape_cast %4 : vector<1x128x128xbf16> to vector<128x128xbf16>
    %cst_4 = arith.constant dense<0.000000e+00> : vector<4x128xf32>
    %6 = tpu.matmul %3, %5, %cst_4 {dimension_numbers = #tpu.dot_dimension_numbers<[1], [0], [0], [1], [0, 0, 1, 1], [], []>} : vector<4x128xbf16>, vector<128x128xbf16>, vector<4x128xf32> -> vector<4x128xf32>
    %7 = arith.addf %2, %6 : vector<4x128xf32>
    %c0_5 = arith.constant 0 : index
    %c0_6 = arith.constant 0 : index
    %8 = vector.load %arg3[%c0_5, %c0_6] : memref<1x128xf32, #tpu.memory_space<vmem>>, vector<1x128xf32>
    %9 = vector.broadcast %8 : vector<1x128xf32> to vector<4x128xf32>
    %10 = arith.addf %7, %9 : vector<4x128xf32>
    %c0_7 = arith.constant 0 : index
    %c0_8 = arith.constant 0 : index
    %c0_9 = arith.constant 0 : index
    %11 = vector.load %arg4[%c0_7, %c0_8, %c0_9] : memref<1x4x128xf32, #tpu.memory_space<vmem>>, vector<1x4x128xf32>
    %12 = vector.shape_cast %11 : vector<1x4x128xf32> to vector<4x128xf32>
    %13 = vector.shape_cast %10 : vector<4x128xf32> to vector<1x4x128xf32>
    tpu.vector_store %arg4[%c0_7, %c0_8, %c0_9], %13 {strides = array<i32>} : memref<1x4x128xf32, #tpu.memory_space<vmem>>, vector<1x4x128xf32>,
    %cst_10 = arith.constant dense<0.000000e+00> : vector<128xf32>
    %14 = vector.multi_reduction <add>, %10, %cst_10 [0] : vector<4x128xf32> to vector<128xf32>
    %15 = vector.shape_cast %14 : vector<128xf32> to vector<1x128xf32>
    %c0_11 = arith.constant 0 : index
    %c0_12 = arith.constant 0 : index
    %c0_13 = arith.constant 0 : index
    %16 = vector.load %arg5[%c0_11, %c0_12, %c0_13] : memref<1x1x128xf32, #tpu.memory_space<vmem>>, vector<1x1x128xf32>
    %17 = vector.shape_cast %16 : vector<1x1x128xf32> to vector<1x128xf32>
    %18 = vector.shape_cast %15 : vector<1x128xf32> to vector<1x1x128xf32>
    tpu.vector_store %arg5[%c0_11, %c0_12, %c0_13], %18 {strides = array<i32>} : memref<1x1x128xf32, #tpu.memory_space<vmem>>, vector<1x1x128xf32>,
    %19 = arith.mulf %10, %10 : vector<4x128xf32>
    %cst_14 = arith.constant dense<0.000000e+00> : vector<128xf32>
    %20 = vector.multi_reduction <add>, %19, %cst_14 [0] : vector<4x128xf32> to vector<128xf32>
    %21 = vector.shape_cast %20 : vector<128xf32> to vector<1x128xf32>
    %c0_15 = arith.constant 0 : index
    %c0_16 = arith.constant 0 : index
    %c0_17 = arith.constant 0 : index
    %22 = vector.load %arg6[%c0_15, %c0_16, %c0_17] : memref<1x1x128xf32, #tpu.memory_space<vmem>>, vector<1x1x128xf32>
    %23 = vector.shape_cast %22 : vector<1x1x128xf32> to vector<1x128xf32>
    %24 = vector.shape_cast %21 : vector<1x128xf32> to vector<1x1x128xf32>
    tpu.vector_store %arg6[%c0_15, %c0_16, %c0_17], %24 {strides = array<i32>} : memref<1x1x128xf32, #tpu.memory_space<vmem>>, vector<1x1x128xf32>,
    return
  }
  func.func @transform_0(%arg0: i32) -> (i32, i32, i32) {
    %c0_i32 = arith.constant 0 : i32
    %c0_i32_0 = arith.constant 0 : i32
    %c0_i32_1 = arith.constant 0 : i32
    return %arg0, %c0_i32, %c0_i32_0 : i32, i32, i32
  }
  func.func @transform_1(%arg0: i32) -> (i32, i32, i32) {
    %c0_i32 = arith.constant 0 : i32
    %c0_i32_0 = arith.constant 0 : i32
    %c0_i32_1 = arith.constant 0 : i32
    %c0_i32_2 = arith.constant 0 : i32
    return %c0_i32, %c0_i32_0, %c0_i32_1 : i32, i32, i32
  }
  func.func @transform_2(%arg0: i32) -> (i32, i32) {
    %c0_i32 = arith.constant 0 : i32
    %c0_i32_0 = arith.constant 0 : i32
    %c0_i32_1 = arith.constant 0 : i32
    return %c0_i32, %c0_i32_0 : i32, i32
  }
  func.func @transform_3(%arg0: i32) -> (i32, i32, i32) {
    %c0_i32 = arith.constant 0 : i32
    %c0_i32_0 = arith.constant 0 : i32
    %c0_i32_1 = arith.constant 0 : i32
    return %arg0, %c0_i32, %c0_i32_0 : i32, i32, i32
  }
  func.func @transform_4(%arg0: i32) -> (i32, i32, i32) {
    %c0_i32 = arith.constant 0 : i32
    %c0_i32_0 = arith.constant 0 : i32
    %c0_i32_1 = arith.constant 0 : i32
    return %arg0, %c0_i32, %c0_i32_0 : i32, i32, i32
  }
  func.func @transform_5(%arg0: i32) -> (i32, i32, i32) {
    %c0_i32 = arith.constant 0 : i32
    %c0_i32_0 = arith.constant 0 : i32
    %c0_i32_1 = arith.constant 0 : i32
    return %arg0, %c0_i32, %c0_i32_0 : i32, i32, i32
  }
}

module attributes {stable_mosaic.version = 11 : i64} {
  func.func @bn_relu_pool_kernel(%arg0: i32, %arg1: memref<1x64x128xf32, #tpu.memory_space<vmem>>, %arg2: memref<2x128xf32, #tpu.memory_space<vmem>>, %arg3: memref<4x64xf32, #tpu.memory_space<vmem>>, %arg4: memref<1x4x128xf32, #tpu.memory_space<vmem>>) attributes {dimension_semantics = [#tpu.dimension_semantics<parallel>], iteration_bounds = array<i64: 2>, scalar_prefetch = 0 : i64, scratch_operands = 0 : i64, tpu.core_type = #tpu.core_type<tc>, window_params = [{transform_indices = @transform_0, window_bounds = array<i64: 1, 64, 128>}, {pipeline_mode = #tpu.pipeline_mode<synchronous>, transform_indices = @transform_1, window_bounds = array<i64: 2, 128>}, {pipeline_mode = #tpu.pipeline_mode<synchronous>, transform_indices = @transform_2, window_bounds = array<i64: 4, 64>}, {transform_indices = @transform_3, window_bounds = array<i64: 1, 4, 128>}]} {
    %c0 = arith.constant 0 : index
    %c0_0 = arith.constant 0 : index
    %c0_1 = arith.constant 0 : index
    %0 = vector.load %arg1[%c0, %c0_0, %c0_1] : memref<1x64x128xf32, #tpu.memory_space<vmem>>, vector<1x64x128xf32>
    %1 = vector.shape_cast %0 : vector<1x64x128xf32> to vector<64x128xf32>
    %c0_2 = arith.constant 0 : index
    %c0_3 = arith.constant 0 : index
    %2 = vector.load %arg2[%c0_2, %c0_3] : memref<2x128xf32, #tpu.memory_space<vmem>>, vector<1x128xf32>
    %3 = vector.broadcast %2 : vector<1x128xf32> to vector<64x128xf32>
    %4 = arith.mulf %1, %3 : vector<64x128xf32>
    %c1 = arith.constant 1 : index
    %c0_4 = arith.constant 0 : index
    %5 = vector.load %arg2[%c1, %c0_4] : memref<2x128xf32, #tpu.memory_space<vmem>>, vector<1x128xf32>
    %6 = vector.broadcast %5 : vector<1x128xf32> to vector<64x128xf32>
    %7 = arith.addf %4, %6 : vector<64x128xf32>
    %cst = arith.constant 0.000000e+00 : f32
    %8 = vector.broadcast %cst : f32 to vector<64x128xf32>
    %9 = arith.maximumf %7, %8 : vector<64x128xf32>
    %c0_5 = arith.constant 0 : index
    %c0_6 = arith.constant 0 : index
    %10 = vector.load %arg3[%c0_5, %c0_6] : memref<4x64xf32, #tpu.memory_space<vmem>>, vector<4x64xf32>
    %cst_7 = arith.constant dense<0.000000e+00> : vector<4x128xf32>
    %11 = tpu.matmul %10, %9, %cst_7 {dimension_numbers = #tpu.dot_dimension_numbers<[1], [0], [0], [1], [0, 0, 1, 1], [], []>} : vector<4x64xf32>, vector<64x128xf32>, vector<4x128xf32> -> vector<4x128xf32>
    %c0_8 = arith.constant 0 : index
    %c0_9 = arith.constant 0 : index
    %c0_10 = arith.constant 0 : index
    %12 = vector.load %arg4[%c0_8, %c0_9, %c0_10] : memref<1x4x128xf32, #tpu.memory_space<vmem>>, vector<1x4x128xf32>
    %13 = vector.shape_cast %12 : vector<1x4x128xf32> to vector<4x128xf32>
    %14 = vector.shape_cast %11 : vector<4x128xf32> to vector<1x4x128xf32>
    tpu.vector_store %arg4[%c0_8, %c0_9, %c0_10], %14 {strides = array<i32>} : memref<1x4x128xf32, #tpu.memory_space<vmem>>, vector<1x4x128xf32>,
    return
  }
  func.func @transform_0(%arg0: i32) -> (i32, i32, i32) {
    %c0_i32 = arith.constant 0 : i32
    %c0_i32_0 = arith.constant 0 : i32
    %c0_i32_1 = arith.constant 0 : i32
    return %arg0, %c0_i32, %c0_i32_0 : i32, i32, i32
  }
  func.func @transform_1(%arg0: i32) -> (i32, i32) {
    %c0_i32 = arith.constant 0 : i32
    %c0_i32_0 = arith.constant 0 : i32
    %c0_i32_1 = arith.constant 0 : i32
    return %c0_i32, %c0_i32_0 : i32, i32
  }
  func.func @transform_2(%arg0: i32) -> (i32, i32) {
    %c0_i32 = arith.constant 0 : i32
    %c0_i32_0 = arith.constant 0 : i32
    %c0_i32_1 = arith.constant 0 : i32
    return %c0_i32, %c0_i32_0 : i32, i32
  }
  func.func @transform_3(%arg0: i32) -> (i32, i32, i32) {
    %c0_i32 = arith.constant 0 : i32
    %c0_i32_0 = arith.constant 0 : i32
    %c0_i32_1 = arith.constant 0 : i32
    return %arg0, %c0_i32, %c0_i32_0 : i32, i32, i32
  }
}

module attributes {stable_mosaic.version = 11 : i64} {
  func.func @bn_relu_pool_kernel(%arg0: i32, %arg1: memref<1x4x128xf32, #tpu.memory_space<vmem>>, %arg2: memref<2x128xf32, #tpu.memory_space<vmem>>, %arg3: memref<1x4xf32, #tpu.memory_space<vmem>>, %arg4: memref<1x1x128xf32, #tpu.memory_space<vmem>>) attributes {dimension_semantics = [#tpu.dimension_semantics<parallel>], iteration_bounds = array<i64: 2>, scalar_prefetch = 0 : i64, scratch_operands = 0 : i64, tpu.core_type = #tpu.core_type<tc>, window_params = [{transform_indices = @transform_0, window_bounds = array<i64: 1, 4, 128>}, {pipeline_mode = #tpu.pipeline_mode<synchronous>, transform_indices = @transform_1, window_bounds = array<i64: 2, 128>}, {pipeline_mode = #tpu.pipeline_mode<synchronous>, transform_indices = @transform_2, window_bounds = array<i64: 1, 4>}, {transform_indices = @transform_3, window_bounds = array<i64: 1, 1, 128>}]} {
    %c0 = arith.constant 0 : index
    %c0_0 = arith.constant 0 : index
    %c0_1 = arith.constant 0 : index
    %0 = vector.load %arg1[%c0, %c0_0, %c0_1] : memref<1x4x128xf32, #tpu.memory_space<vmem>>, vector<1x4x128xf32>
    %1 = vector.shape_cast %0 : vector<1x4x128xf32> to vector<4x128xf32>
    %c0_2 = arith.constant 0 : index
    %c0_3 = arith.constant 0 : index
    %2 = vector.load %arg2[%c0_2, %c0_3] : memref<2x128xf32, #tpu.memory_space<vmem>>, vector<1x128xf32>
    %3 = vector.broadcast %2 : vector<1x128xf32> to vector<4x128xf32>
    %4 = arith.mulf %1, %3 : vector<4x128xf32>
    %c1 = arith.constant 1 : index
    %c0_4 = arith.constant 0 : index
    %5 = vector.load %arg2[%c1, %c0_4] : memref<2x128xf32, #tpu.memory_space<vmem>>, vector<1x128xf32>
    %6 = vector.broadcast %5 : vector<1x128xf32> to vector<4x128xf32>
    %7 = arith.addf %4, %6 : vector<4x128xf32>
    %cst = arith.constant 0.000000e+00 : f32
    %8 = vector.broadcast %cst : f32 to vector<4x128xf32>
    %9 = arith.maximumf %7, %8 : vector<4x128xf32>
    %cst_5 = arith.constant dense<0.000000e+00> : vector<128xf32>
    %10 = vector.multi_reduction <add>, %9, %cst_5 [0] : vector<4x128xf32> to vector<128xf32>
    %11 = vector.shape_cast %10 : vector<128xf32> to vector<1x128xf32>
    %cst_6 = arith.constant 2.500000e-01 : f32
    %12 = vector.broadcast %cst_6 : f32 to vector<1x128xf32>
    %13 = arith.mulf %11, %12 : vector<1x128xf32>
    %c0_7 = arith.constant 0 : index
    %c0_8 = arith.constant 0 : index
    %c0_9 = arith.constant 0 : index
    %14 = vector.load %arg4[%c0_7, %c0_8, %c0_9] : memref<1x1x128xf32, #tpu.memory_space<vmem>>, vector<1x1x128xf32>
    %15 = vector.shape_cast %14 : vector<1x1x128xf32> to vector<1x128xf32>
    %16 = vector.shape_cast %13 : vector<1x128xf32> to vector<1x1x128xf32>
    tpu.vector_store %arg4[%c0_7, %c0_8, %c0_9], %16 {strides = array<i32>} : memref<1x1x128xf32, #tpu.memory_space<vmem>>, vector<1x1x128xf32>,
    return
  }
  func.func @transform_0(%arg0: i32) -> (i32, i32, i32) {
    %c0_i32 = arith.constant 0 : i32
    %c0_i32_0 = arith.constant 0 : i32
    %c0_i32_1 = arith.constant 0 : i32
    return %arg0, %c0_i32, %c0_i32_0 : i32, i32, i32
  }
  func.func @transform_1(%arg0: i32) -> (i32, i32) {
    %c0_i32 = arith.constant 0 : i32
    %c0_i32_0 = arith.constant 0 : i32
    %c0_i32_1 = arith.constant 0 : i32
    return %c0_i32, %c0_i32_0 : i32, i32
  }
  func.func @transform_2(%arg0: i32) -> (i32, i32) {
    %c0_i32 = arith.constant 0 : i32
    %c0_i32_0 = arith.constant 0 : i32
    %c0_i32_1 = arith.constant 0 : i32
    return %c0_i32, %c0_i32_0 : i32, i32
  }
  func.func @transform_3(%arg0: i32) -> (i32, i32, i32) {
    %c0_i32 = arith.constant 0 : i32
    %c0_i32_0 = arith.constant 0 : i32
    %c0_i32_1 = arith.constant 0 : i32
    return %arg0, %c0_i32, %c0_i32_0 : i32, i32, i32
  }
}

</mosaic_0001>

<bundles_post_ra>
// kernel: token_generator.5
= control target key start
LH: loop header
LB: loop body
LE: loop exit
PB: predicated region body
PF: predicated region fallthrough
CT: control target
= control target key end

     0   :  { %vm102_vm0 = vcmask 392192   ;;  %s426_s1 = inlined_call_operand.vmem [shape: bf16[48,128], index: 1, kind: input, shape index: {}]   ;;  %s427_s0 = inlined_call_operand.vmem [shape: bf16[128,48], index: 0, kind: input, shape index: {}]   ;;  %s428_s2 = inlined_call_operand.vmem [shape: f32[1,128], index: 2, kind: input, shape index: {}]   ;;  %s429_s3 = inlined_call_operand.vmem [shape: f32[128,128], index: 3, kind: output, shape index: {}]  }
   0x1   :  { %v303_v0 = vld [vmem:[%s426_s1 + $0x10] sm:$0xff]   ;;  %v304_v1 = vld [vmem:[%s426_s1 + $0x8] sm:$0xff]   ;;  %v305_v2 = vld [vmem:[%s426_s1] sm:$0xff]  }
   0x2   :  { %275 = vmatprep.subr.bf16.mxu0 %v303_v0  ;;  %297 = vmatprep.subr.bf16.mxu1 %v303_v0  ;;  %v306_v3 = vld [vmem:[%s427_s0] sm:$0xff]   ;;  %v308_v5 = vld [vmem:[%s427_s0 + $0x8] sm:$0xff]   ;;  %v310_v7 = vld [vmem:[%s427_s0 + $0x10] sm:$0xff]  }
   0x3   :  { %276 = vmatpush3.bf16.msra.mxu0 %v303_v0  ;;  %300 = vmatpush3.bf16.msra.mxu1 %v303_v0  ;;  %v307_v4 = vld [vmem:[%s427_s0 + $0x20] sm:$0xff]   ;;  %v309_v6 = vld [vmem:[%s427_s0 + $0x28] sm:$0xff]   ;;  %v311_v8 = vld [vmem:[%s427_s0 + $0x30] sm:$0xff]  }
   0x4   :  { %277 = vmatprep.subr.bf16.mxu0 %v304_v1  ;;  %298 = vmatprep.subr.bf16.mxu1 %v304_v1  ;;  %v312_v9 = vld [vmem:[%s427_s0 + $0x18] sm:$0xff]   ;;  %v244_v11 = vld [vmem:[%s428_s2] ss:$0 sm:$0xff] }
   0x5   :  { %281 = vmatprep.mubr.msk.bf16.mxu0 %vm102_vm0, %v306_v3  ;;  %289 = vmatprep.mubr.msk.bf16.mxu1 %vm102_vm0, %v307_v4  ;;  %v313_v10 = vld [vmem:[%s427_s0 + $0x38] sm:$0xff]  }
   0x7   :  { %278 = vmatpush3.bf16.msra.mxu0 %v304_v1  ;;  %301 = vmatpush3.bf16.msra.mxu1 %v304_v1 }
   0x8   :  { %279 = vmatprep.subr.bf16.mxu0 %v305_v2  ;;  %299 = vmatprep.subr.bf16.mxu1 %v305_v2 }
   0xb   :  { %280 = vmatpush3.bf16.msra.mxu0 %v305_v2  ;;  %302 = vmatpush3.bf16.msra.mxu1 %v305_v2 }
   0xe   :  { %282 = vmatmul.mubr.msk.bf16.vlgmr.msra.gmra.mxu0 %vm102_vm0, %v308_v5  ;;  %290 = vmatmul.mubr.msk.bf16.vlgmr.msra.gmra.mxu1 %vm102_vm0, %v309_v6 }
   0xf   :  { %285 = vmatprep.mubr.msk.bf16.mxu0 %vm102_vm0, %v310_v7  ;;  %293 = vmatprep.mubr.msk.bf16.mxu1 %vm102_vm0, %v311_v8 }
  0x16   :  { %286 = vmatmul.mubr.msk.bf16.gmra.mxu0 %vm102_vm0, %v312_v9  ;;  %294 = vmatmul.mubr.msk.bf16.gmra.mxu1 %vm102_vm0, %v313_v10 }
  0xce   :  { %v283_v12 = vpop.f32.mrf.mxu0  ;;  %v291_v13 = vpop.f32.mrf.mxu1 }
  0xcf   :  { %v170_v14 = vadd.f32 %v283_v12, %v244_v11  ;;  %v202_v15 = vadd.f32 %v291_v13, %v244_v11 }
  0xd0   :  { %v161_v16 = vpop.f32.mrf.mxu0  ;;  %v193_v17 = vpop.f32.mrf.mxu1 }
  0xd1   :  { %226 = vst [vmem:[%s429_s3 + $0x10] sm:$0xff] %v170_v14  ;;  %234 = vst [vmem:[%s429_s3 + $0x50] sm:$0xff] %v202_v15  ;;  %v162_v18 = vadd.f32 %v244_v11, %v161_v16  ;;  %v194_v19 = vadd.f32 %v244_v11, %v193_v17 }
  0xd2   :  { %v284_v20 = vpop.f32.mrf.mxu0  ;;  %v292_v21 = vpop.f32.mrf.mxu1 }
  0xd3   :  { %224 = vst [vmem:[%s429_s3] sm:$0xff] %v162_v18  ;;  %232 = vst [vmem:[%s429_s3 + $0x40] sm:$0xff] %v194_v19  ;;  %v173_v22 = vadd.f32 %v284_v20, %v244_v11  ;;  %v205_v23 = vadd.f32 %v292_v21, %v244_v11 }
  0xd4   :  { %v164_v24 = vpop.f32.mrf.mxu0  ;;  %v196_v25 = vpop.f32.mrf.mxu1 }
  0xd5   :  { %227 = vst [vmem:[%s429_s3 + $0x18] sm:$0xff] %v173_v22  ;;  %235 = vst [vmem:[%s429_s3 + $0x58] sm:$0xff] %v205_v23  ;;  %v165_v26 = vadd.f32 %v244_v11, %v164_v24  ;;  %v197_v27 = vadd.f32 %v244_v11, %v196_v25 }
  0xd6   :  { %v287_v28 = vpop.f32.mrf.mxu0  ;;  %v295_v29 = vpop.f32.mrf.mxu1 }
  0xd7   :  { %225 = vst [vmem:[%s429_s3 + $0x8] sm:$0xff] %v165_v26  ;;  %233 = vst [vmem:[%s429_s3 + $0x48] sm:$0xff] %v197_v27  ;;  %v186_v30 = vadd.f32 %v287_v28, %v244_v11  ;;  %v218_v31 = vadd.f32 %v295_v29, %v244_v11 }
  0xd8   :  { %v177_v32 = vpop.f32.mrf.mxu0  ;;  %v209_v33 = vpop.f32.mrf.mxu1 }
  0xd9   :  { %230 = vst [vmem:[%s429_s3 + $0x30] sm:$0xff] %v186_v30  ;;  %238 = vst [vmem:[%s429_s3 + $0x70] sm:$0xff] %v218_v31  ;;  %v178_v34 = vadd.f32 %v244_v11, %v177_v32  ;;  %v210_v35 = vadd.f32 %v244_v11, %v209_v33 }
  0xda   :  { %v288_v36 = vpop.f32.mrf.mxu0  ;;  %v296_v37 = vpop.f32.mrf.mxu1 }
  0xdb   :  { %228 = vst [vmem:[%s429_s3 + $0x20] sm:$0xff] %v178_v34  ;;  %236 = vst [vmem:[%s429_s3 + $0x60] sm:$0xff] %v210_v35  ;;  %v189_v38 = vadd.f32 %v288_v36, %v244_v11  ;;  %v221_v39 = vadd.f32 %v296_v37, %v244_v11 }
  0xdc   :  { %v180_v40 = vpop.f32.mrf.mxu0  ;;  %v212_v41 = vpop.f32.mrf.mxu1 }
  0xdd   :  { %231 = vst [vmem:[%s429_s3 + $0x38] sm:$0xff] %v189_v38  ;;  %239 = vst [vmem:[%s429_s3 + $0x78] sm:$0xff] %v221_v39  ;;  %v181_v42 = vadd.f32 %v244_v11, %v180_v40  ;;  %v213_v43 = vadd.f32 %v244_v11, %v212_v41 }
  0xdf   :  { %229 = vst [vmem:[%s429_s3 + $0x28] sm:$0xff] %v181_v42  ;;  %237 = vst [vmem:[%s429_s3 + $0x68] sm:$0xff] %v213_v43 }

// kernel: token_generator.8
= control target key start
LH: loop header
LB: loop body
LE: loop exit
PB: predicated region body
PF: predicated region fallthrough
CT: control target
= control target key end

     0   :  { %s595_s18 = smov 0   ;;  %s650_s0 = inlined_call_operand.vmem [shape: f32[2,4,128], index: 0, kind: input, shape index: {}]   ;;  %s651_s1 = inlined_call_operand.vmem [shape: bf16[9,128,128], index: 1, kind: input, shape index: {}]   ;;  %s652_s2 = inlined_call_operand.vmem [shape: f32[1,128], index: 2, kind: input, shape index: {}]   ;;  %s653_s3 = inlined_call_operand.vmem [shape: f32[2,4,128], index: 3, kind: output, shape index: {0}]   ;;  %s654_s4 = inlined_call_operand.vmem [shape: f32[2,1,128], index: 4, kind: output, shape index: {1}]   ;;  %s655_s5 = inlined_call_operand.vmem [shape: f32[2,1,128], index: 5, kind: output, shape index: {2}]  }
   0x1 LB: > { %s474_s19 = sadd.s32 4294967295, %s561_s18   ;;  %p478_p0 = scmp.ge.s32.totalorder %s561_s18, 1  ;;  %s561_s18 = sphi %s595_s18, %s16_s18  }
   0x2   : > { %p191_p1 = scmp.lt.s32.totalorder %s561_s18, 3 }
   0x4   : > { %p192_p2 = pnand %p478_p0, %p191_p1 }
   0x5   : > { %p223_p3 = scmp.lt.s32.totalorder (!%p192_p2), %s474_s19, 1 }
   0x6   : > { %195 = sbr.rel (%p192_p2) target bundleno = 255 (0xff), region = 32 }
   0xb   : > { %v547_v0 = vld [vmem:[%s651_s1 + $0x138] sm:$0xff]   ;;  %v563_v1 = vmov 0.0   ;;  %v548_v2 = vld [vmem:[%s651_s1 + $0x130] sm:$0xff]   ;;  %vm564_vm0 = vmmov 0   ;;  %v549_v3 = vld [vmem:[%s651_s1 + $0x128] sm:$0xff]   ;;  %s657_s19 = smov (!%p223_p3, %s474_s19), 1 }
   0xc   : > { %517 = vmatprep.subr.bf16.mxu0 %v563_v1  ;;  %533 = vmatprep.mubr.msk.bf16.mxu0 %vm564_vm0, %v563_v1  ;;  %v550_v4 = vld [vmem:[%s651_s1 + $0x120] sm:$0xff]   ;;  %v551_v5 = vld [vmem:[%s651_s1 + $0x118] sm:$0xff]   ;;  %v552_v6 = vld [vmem:[%s651_s1 + $0x110] sm:$0xff]   ;;  %s479_s7 = sshll.u32 %s657_s19, 2  ;;  %vm353_vm1 = vcmask 1043456   ;;  %s233_s24 = scalar_lea.vmem %s654_s4, %s657_s19 }
   0xd   : > { %518 = vmatpush3.bf16.msra.mxu0 %v547_v0  ;;  %v553_v7 = vld [vmem:[%s651_s1 + $0x108] sm:$0xff]   ;;  %s226_s12 = scalar_lea.vmem %s650_s0, %s479_s7  ;;  %v554_v8 = vld [vmem:[%s651_s1 + $0x100] sm:$0xff]   ;;  %s230_s21 = scalar_lea.vmem %s653_s3, %s479_s7 }
   0xe   : > { %519 = vmatprep.subr.bf16.mxu0 %v563_v1  ;;  %v238_v9 = vld [vmem:[%s226_s12] sm:$0xf]  ;;  %s236_s27 = scalar_lea.vmem %s655_s5, %s657_s19 }
   0xf   : > { %v239_v10 = vpack.c.bf16 %v238_v9, %v238_v9  ;;  %v497_v11 = vld [vmem:[%s652_s2] ss:$0 sm:$0xff] }
  0x11   : > { %520 = vmatpush3.bf16.msra.mxu0 %v548_v2 }
  0x12   : > { %521 = vmatprep.subr.bf16.mxu0 %v563_v1 }
  0x15   : > { %522 = vmatpush3.bf16.msra.mxu0 %v549_v3 }
  0x16   : > { %523 = vmatprep.subr.bf16.mxu0 %v563_v1 }
  0x19   : > { %524 = vmatpush3.bf16.msra.mxu0 %v550_v4 }
  0x1a   : > { %525 = vmatprep.subr.bf16.mxu0 %v563_v1 }
  0x1d   : > { %526 = vmatpush3.bf16.msra.mxu0 %v551_v5 }
  0x1e   : > { %527 = vmatprep.subr.bf16.mxu0 %v563_v1 }
  0x21   : > { %528 = vmatpush3.bf16.msra.mxu0 %v552_v6 }
  0x22   : > { %529 = vmatprep.subr.bf16.mxu0 %v563_v1 }
  0x25   : > { %530 = vmatpush3.bf16.msra.mxu0 %v553_v7 }
  0x26   : > { %531 = vmatprep.subr.bf16.mxu0 %v563_v1 }
  0x29   : > { %532 = vmatpush3.bf16.msra.mxu0 %v554_v8 }
  0x2c   : > { %534 = vmatmul.mubr.bf16.vlgmr.msra.gmra.mxu0 %v239_v10 }
  0xec   : > { %v346_v12 = vpop.f32.mrf.mxu0 }
  0xed   : > { %v347_v13 = vadd.f32 %v497_v11, %v346_v12 }
  0xee   : > { %v535_v14 = vpop.f32.mrf.mxu0 }
  0xef   : > { %352 = vst [vmem:[%s230_s21] sm:$0xf] %v347_v13  ;;  %v354_v15 = vsel %vm353_vm1, %v347_v13, 0.0  ;;  %v362_v16 = vmul.f32 %v347_v13, %v347_v13 }
  0xf0   : > { %v355_v17 = vrot.slane %v354_v15, 4  ;;  %v349_v18 = vpop.f32.mrf.mxu0 }
  0xf1   : > { %v363_v19 = vsel %vm353_vm1, %v362_v16, 0.0 }
  0xf2   : > { %v356_v20 = vadd.f32 %v355_v17, %v354_v15  ;;  %v364_v21 = vrot.slane %v363_v19, 4  ;;  %v536_v22 = vpop.f32.mrf.mxu0 }
  0xf4   : > { %v357_v23 = vrot.slane %v356_v20, 2  ;;  %v365_v24 = vadd.f32 %v364_v21, %v363_v19 }
  0xf6   : > { %v358_v25 = vadd.f32 %v357_v23, %v356_v20  ;;  %v366_v26 = vrot.slane %v365_v24, 2 }
  0xf8   : > { %v359_v27 = vrot.slane %v358_v25, 1  ;;  %v367_v28 = vadd.f32 %v366_v26, %v365_v24 }
  0xfa   : > { %v360_v29 = vadd.f32 %v359_v27, %v358_v25  ;;  %v368_v30 = vrot.slane %v367_v28, 1 }
  0xfc   : > { %361 = vst [vmem:[%s233_s24] sm:$0x1] %v360_v29  ;;  %v369_v31 = vadd.f32 %v368_v30, %v367_v28 }
  0xfe   : > { %370 = vst [vmem:[%s236_s27] sm:$0x1] %v369_v31 }
  0xff PF: > { %s16_s18 = sadd.s32 1, %s561_s18  }
 0x100   : > { %p13_p4 = scmp.ge.s32.totalorder %s16_s18, 4  }
 0x102   :  { %15 = sbr.rel (!%p13_p4) target bundleno = 1 (0x1), region = 87 }

// kernel: token_generator.7
= control target key start
LH: loop header
LB: loop body
LE: loop exit
PB: predicated region body
PF: predicated region fallthrough
CT: control target
= control target key end

     0   :  { %s422_s12 = smov 0   ;;  %s452_s0 = inlined_call_operand.vmem [shape: f32[2,64,128], index: 0, kind: input, shape index: {}]   ;;  %s453_s1 = inlined_call_operand.vmem [shape: f32[2,128], index: 1, kind: input, shape index: {}]   ;;  %s454_s2 = inlined_call_operand.vmem [shape: f32[4,64], index: 2, kind: input, shape index: {}]   ;;  %s455_s3 = inlined_call_operand.vmem [shape: f32[2,4,128], index: 3, kind: output, shape index: {}]  }
   0x1 LB: > { %s340_s13 = sadd.s32 4294967295, %s398_s12   ;;  %p344_p0 = scmp.ge.s32.totalorder %s398_s12, 1  ;;  %s398_s12 = sphi %s422_s12, %s13_s12  }
   0x2   : > { %p137_p1 = scmp.lt.s32.totalorder %s398_s12, 3 }
   0x4   : > { %p138_p2 = pnand %p344_p0, %p137_p1 }
   0x5   : > { %p160_p3 = scmp.lt.s32.totalorder (!%p138_p2), %s340_s13, 1 }
   0x6   : > { %141 = sbr.rel (%p138_p2) target bundleno = 231 (0xe7), region = 32 }
   0xb   : > { %v400_v0 = vmov 0.0   ;;  %s457_s13 = smov (!%p160_p3, %s340_s13), 1  ;;  %vm401_vm0 = vmmov 0   ;;  %v348_v1 = vld [vmem:[%s453_s1] ss:$0 sm:$0xff]  ;;  %vm212_vm1 = vcmask 523264  }
   0xc   : > { %363 = vmatprep.subr.mxu0 %v400_v0  ;;  %379 = vmatprep.mubr.msk.f32.mxu0 %vm401_vm0, %v400_v0  ;;  %s353_s14 = sshll.u32 %s457_s13, 6  ;;  %v349_v2 = vld [vmem:[%s453_s1 + $0x1] ss:$0 sm:$0xff]  ;;  %s347_s24 = sshll.u32 %s457_s13, 2 }
   0xd   : > { %s164_s19 = scalar_lea.vmem %s452_s0, %s353_s14  ;;  %v211_v35 = vld [vmem:[%s454_s2] sm:$0xf]  ;;  %s168_s27 = scalar_lea.vmem %s455_s3, %s347_s24 }
   0xe   : > { %v176_v3 = vld [vmem:[%s164_s19 + $0x38] sm:$0xff]  ;;  %v175_v4 = vld [vmem:[%s164_s19 + $0x30] sm:$0xff]  ;;  %v174_v5 = vld [vmem:[%s164_s19 + $0x28] sm:$0xff] }
   0xf   : > { %v189_v6 = vmul.f32 %v348_v1, %v176_v3  ;;  %v188_v7 = vmul.f32 %v348_v1, %v175_v4  ;;  %v187_v8 = vmul.f32 %v348_v1, %v174_v5  ;;  %v173_v9 = vld [vmem:[%s164_s19 + $0x20] sm:$0xff]  ;;  %v172_v10 = vld [vmem:[%s164_s19 + $0x18] sm:$0xff]  ;;  %v171_v12 = vld [vmem:[%s164_s19 + $0x10] sm:$0xff] }
  0x10   : > { %v186_v11 = vmul.f32 %v348_v1, %v173_v9  ;;  %v185_v16 = vmul.f32 %v348_v1, %v172_v10  ;;  %v170_v17 = vld [vmem:[%s164_s19 + $0x8] sm:$0xff]  ;;  %v184_v21 = vmul.f32 %v348_v1, %v171_v12  ;;  %v169_v22 = vld [vmem:[%s164_s19] sm:$0xff] }
  0x11   : > { %v202_v13 = vadd.f32 %v349_v2, %v189_v6  ;;  %v201_v14 = vadd.f32 %v349_v2, %v188_v7  ;;  %v200_v15 = vadd.f32 %v349_v2, %v187_v8  ;;  %v183_v25 = vmul.f32 %v348_v1, %v170_v17 }
  0x12   : > { %v199_v20 = vadd.f32 %v349_v2, %v186_v11  ;;  %v198_v24 = vadd.f32 %v349_v2, %v185_v16  ;;  %v197_v27 = vadd.f32 %v349_v2, %v184_v21  ;;  %v182_v28 = vmul.f32 %v348_v1, %v169_v22 }
  0x13   : > { %v210_v18 = vmax.f32 %v202_v13, 0.0  ;;  %v209_v19 = vmax.f32 %v201_v14, 0.0  ;;  %v208_v23 = vmax.f32 %v200_v15, 0.0  ;;  %v196_v30 = vadd.f32 %v349_v2, %v183_v25 }
  0x14   : > { %v207_v26 = vmax.f32 %v199_v20, 0.0  ;;  %v206_v29 = vmax.f32 %v198_v24, 0.0  ;;  %v205_v31 = vmax.f32 %v197_v27, 0.0  ;;  %v195_v32 = vadd.f32 %v349_v2, %v182_v28 }
  0x15   : > { %364 = vmatpush3.msra.mxu0 %v210_v18  ;;  %v204_v33 = vmax.f32 %v196_v30, 0.0 }
  0x16   : > { %365 = vmatprep.subr.mxu0 %v400_v0  ;;  %v203_v34 = vmax.f32 %v195_v32, 0.0 }
  0x17   : > { %366 = vmatpush3.msra.mxu0 %v209_v19 }
  0x18   : > { %367 = vmatprep.subr.mxu0 %v400_v0 }
  0x19   : > { %368 = vmatpush3.msra.mxu0 %v208_v23 }
  0x1a   : > { %369 = vmatprep.subr.mxu0 %v400_v0 }
  0x1b   : > { %370 = vmatpush3.msra.mxu0 %v207_v26 }
  0x1c   : > { %371 = vmatprep.subr.mxu0 %v400_v0 }
  0x1d   : > { %372 = vmatpush3.msra.mxu0 %v206_v29 }
  0x1e   : > { %373 = vmatprep.subr.mxu0 %v400_v0 }
  0x1f   : > { %374 = vmatpush3.msra.mxu0 %v205_v31 }
  0x20   : > { %375 = vmatprep.subr.mxu0 %v400_v0 }
  0x21   : > { %376 = vmatpush3.msra.mxu0 %v204_v33 }
  0x22   : > { %377 = vmatprep.subr.mxu0 %v400_v0 }
  0x23   : > { %378 = vmatpush3.msra.mxu0 %v203_v34 }
  0x24   : > { %380 = vmatmul.mubr.msk.f32.vlgmr.msra.gmra.mxu0 %vm212_vm1, %v211_v35 }
  0xe4   : > { %v282_v36 = vpop.f32.mrf.mxu0 }
  0xe5   : > { %286 = vst [vmem:[%s168_s27] sm:$0xf] %v282_v36 }
  0xe6   : > { %v381_v37 = vpop.f32.mrf.mxu0 }
  0xe7 PF: > { %s13_s12 = sadd.s32 1, %s398_s12  }
  0xe8   : > { %p10_p4 = scmp.ge.s32.totalorder %s13_s12, 4  }
  0xea   :  { %12 = sbr.rel (!%p10_p4) target bundleno = 1 (0x1), region = 62 }

// kernel: token_generator.9
= control target key start
LH: loop header
LB: loop body
LE: loop exit
PB: predicated region body
PF: predicated region fallthrough
CT: control target
= control target key end

     0   :  { %s281_s12 = smov 0   ;;  %s304_s0 = inlined_call_operand.vmem [shape: f32[2,4,128], index: 0, kind: input, shape index: {}]   ;;  %s305_s1 = inlined_call_operand.vmem [shape: f32[2,128], index: 1, kind: input, shape index: {}]   ;;  %s306_s2 = inlined_call_operand.vmem [shape: f32[1,4], index: 2, kind: input, shape index: {}]   ;;  %s307_s3 = inlined_call_operand.vmem [shape: f32[2,1,128], index: 3, kind: output, shape index: {}]  }
   0x1 LB: > { %s235_s13 = sadd.s32 4294967295, %s259_s12   ;;  %p239_p0 = scmp.ge.s32.totalorder %s259_s12, 1  ;;  %s259_s12 = sphi %s281_s12, %s13_s12  }
   0x2   : > { %p136_p1 = scmp.lt.s32.totalorder %s259_s12, 3 }
   0x4   : > { %p137_p2 = pnand %p239_p0, %p136_p1 }
   0x5   : > { %p157_p3 = scmp.lt.s32.totalorder (!%p137_p2), %s235_s13, 1 }
   0x6   : > { %140 = sbr.rel (%p137_p2) target bundleno = 37 (0x25), region = 32 }
   0xb   : > { %s309_s13 = smov (!%p157_p3, %s235_s13), 1  ;;  %v241_v0 = vld [vmem:[%s305_s1] ss:$0 sm:$0xff]  ;;  %v242_v2 = vld [vmem:[%s305_s1 + $0x1] ss:$0 sm:$0xff]  ;;  %vm178_vm0 = vcmask 1043456  }
   0xc   : > { %s240_s2 = sshll.u32 %s309_s13, 2  ;;  %s163_s23 = scalar_lea.vmem %s307_s3, %s309_s13 }
   0xd   : > { %s160_s18 = scalar_lea.vmem %s304_s0, %s240_s2 }
   0xe   : > { %v164_v1 = vld [vmem:[%s160_s18] sm:$0xf] }
   0xf   : > { %v170_v3 = vmul.f32 %v241_v0, %v164_v1 }
  0x11   : > { %v176_v4 = vadd.f32 %v242_v2, %v170_v3 }
  0x13   : > { %v177_v5 = vmax.f32 %v176_v4, 0.0 }
  0x15   : > { %v179_v6 = vsel %vm178_vm0, %v177_v5, 0.0 }
  0x16   : > { %v180_v7 = vrot.slane %v179_v6, 4 }
  0x18   : > { %v181_v8 = vadd.f32 %v180_v7, %v179_v6 }
  0x1a   : > { %v182_v9 = vrot.slane %v181_v8, 2 }
  0x1c   : > { %v183_v10 = vadd.f32 %v182_v9, %v181_v8 }
  0x1e   : > { %v184_v11 = vrot.slane %v183_v10, 1 }
  0x20   : > { %v185_v12 = vadd.f32 %v184_v11, %v183_v10 }
  0x22   : > { %v186_v13 = vmul.f32 0.25, %v185_v12 }
  0x24   : > { %187 = vst [vmem:[%s163_s23] sm:$0x1] %v186_v13 }
  0x25 PF: > { %s13_s12 = sadd.s32 1, %s259_s12  }
  0x26   : > { %p10_p4 = scmp.ge.s32.totalorder %s13_s12, 4  }
  0x28   :  { %12 = sbr.rel (!%p10_p4) target bundleno = 1 (0x1), region = 62 }

// kernel: token_generator.6
= control target key start
LH: loop header
LB: loop body
LE: loop exit
PB: predicated region body
PF: predicated region fallthrough
CT: control target
= control target key end

     0   :  { %s2755_s18 = smov 0   ;;  %s3353_s0 = inlined_call_operand.vmem [shape: f32[2,64,128], index: 0, kind: input, shape index: {}]   ;;  %s3354_s1 = inlined_call_operand.vmem [shape: bf16[9,128,128], index: 1, kind: input, shape index: {}]   ;;  %s3355_s2 = inlined_call_operand.vmem [shape: f32[1,128], index: 2, kind: input, shape index: {}]   ;;  %s3356_s3 = inlined_call_operand.vmem [shape: f32[2,64,128], index: 3, kind: output, shape index: {0}]   ;;  %s3357_s4 = inlined_call_operand.vmem [shape: f32[2,1,128], index: 4, kind: output, shape index: {1}]   ;;  %s3358_s5 = inlined_call_operand.vmem [shape: f32[2,1,128], index: 5, kind: output, shape index: {2}]  }
   0x1 LB: > { %s2009_s19 = sadd.s32 4294967295, %s2722_s18   ;;  %p2013_p0 = scmp.ge.s32.totalorder %s2722_s18, 1  ;;  %s2722_s18 = sphi %s2755_s18, %s16_s18  }
   0x2   : > { %p192_p1 = scmp.lt.s32.totalorder %s2722_s18, 3 }
   0x4   : > { %p193_p2 = pnand %p2013_p0, %p192_p1 }
   0x6   : > { %196 = sbr.rel (%p193_p2) target bundleno = 404 (0x194), region = 32 }
   0xb   : > { %v2644_v0 = vld [vmem:[%s3354_s1 + $0x78] sm:$0xff]   ;;  %v271_v1 = vlaneseq  ;;  %v2646_v3 = vld [vmem:[%s3354_s1 + $0x70] sm:$0xff]   ;;  %p2772_p3 = scmp.lt.s32.totalorder %s2009_s19, 1  ;;  %v2724_v4 = vmov 0.0   ;;  %v2648_v6 = vld [vmem:[%s3354_s1 + $0x68] sm:$0xff]  }
   0xc   : > { %v2645_v2 = vld [vmem:[%s3354_s1 + $0x38] sm:$0xff]   ;;  %2403 = vmatprep.subr.bf16.mxu0 %v2644_v0  ;;  %252 = vst [vmem:[#allocation2 + $0x8] sm:$0xff] %v2724_v4  ;;  %251 = vst [vmem:[#allocation2] sm:$0xff] %v2724_v4  ;;  %v2647_v5 = vld [vmem:[%s3354_s1 + $0x30] sm:$0xff]  }
   0xd   : > { %261 = vst [vmem:[#allocation2 + $0x50] sm:$0xff] %v2724_v4  ;;  %262 = vst [vmem:[#allocation2 + $0x58] sm:$0xff] %v2724_v4  ;;  %2427 = vmatprep.subr.bf16.mxu1 %v2645_v2  ;;  %2404 = vmatpush3.bf16.msra.mxu0 %v2644_v0  ;;  %v2786_v7 = vshrl.u32 %v271_v1, 7  ;;  %v2649_v8 = vld [vmem:[%s3354_s1 + $0x28] sm:$0xff]   ;;  %s3389_s19 = smov (!%p2772_p3, %s2009_s19), 1  ;;  %v2650_v9 = vld [vmem:[%s3354_s1 + $0x60] sm:$0xff]  }
   0xe   : > { %2428 = vmatpush3.bf16.msra.mxu1 %v2645_v2  ;;  %2405 = vmatprep.subr.bf16.mxu0 %v2646_v3  ;;  %v2651_v11 = vld [vmem:[%s3354_s1 + $0x20] sm:$0xff]   ;;  %s2293_s12 = sshll.u32 %s3389_s19, 6  ;;  %v2652_v13 = vld [vmem:[%s3354_s1 + $0x58] sm:$0xff]   ;;  %v2654_v17 = vld [vmem:[%s3354_s1 + $0x50] sm:$0xff]   ;;  %s238_s20 = scalar_lea.vmem %s3357_s4, %s3389_s19 }
   0xf   : > { %2429 = vmatprep.subr.bf16.mxu1 %v2647_v5  ;;  %v2799_v10 = vadd.s32 8, %v2786_v7  ;;  %v284_v12 = vand.u32 7, %v2786_v7  ;;  %v2653_v15 = vld [vmem:[%s3354_s1 + $0x18] sm:$0xff]   ;;  %s2818_s21 = scalar_lea.vmem %s3353_s0, %s2293_s12  ;;  %v2821_v16 = vadd.s32 16, %v2786_v7  ;;  %v2655_v18 = vld [vmem:[%s3354_s1 + $0x10] sm:$0xff]   ;;  %v2846_v25 = vadd.s32 24, %v2786_v7  ;;  %s3330_s16 = scalar_lea.vmem %s3356_s3, %s2293_s12 }
  0x10   : > { %v2830_v19 = vld [vmem:[%s2818_s21] sm:$0xff]  ;;  %v2840_v23 = vld [vmem:[%s2818_s21 + $0x8] sm:$0xff]  ;;  %v2843_v24 = vld [vmem:[%s2818_s21 + $0x10] sm:$0xff]  ;;  %v2852_v27 = vadd.s32 32, %v2786_v7  ;;  %v2858_v29 = vadd.s32 40, %v2786_v7  ;;  %v2884_v42 = vadd.s32 48, %v2786_v7  ;;  %s241_s24 = scalar_lea.vmem %s3358_s5, %s3389_s19 }
  0x11   : > { %2406 = vmatpush3.bf16.msra.mxu0 %v2646_v3  ;;  %v291_v14 = vand.u32 7, %v2799_v10  ;;  %v384_v20 = vadd.s32 4294967295, %v284_v12  ;;  %263 = vst [vmem:[#allocation2 + $0x10] sm:$0xff] %v2830_v19  ;;  %v468_v22 = vpack.c.bf16 %v2830_v19, %v2724_v4  ;;  %264 = vst [vmem:[#allocation2 + $0x18] sm:$0xff] %v2840_v23  ;;  %v298_v26 = vand.u32 7, %v2821_v16  ;;  %v2656_v28 = vld [vmem:[%s3354_s1 + $0x48] sm:$0xff]  }
  0x12   : > { %2430 = vmatpush3.bf16.msra.mxu1 %v2647_v5  ;;  %2407 = vmatprep.subr.bf16.mxu0 %v2648_v6  ;;  %265 = vst [vmem:[#allocation2 + $0x20] sm:$0xff] %v2843_v24  ;;  %v2657_v30 = vld [vmem:[%s3354_s1 + $0x8] sm:$0xff]   ;;  %v305_v31 = vand.u32 7, %v2846_v25  ;;  %v2658_v32 = vld [vmem:[%s3354_s1 + $0x40] sm:$0xff]   ;;  %v312_v36 = vand.u32 7, %v2852_v27  ;;  %v319_v38 = vand.u32 7, %v2858_v29  ;;  %v2915_v54 = vpack.c.bf16 %v2843_v24, %v2840_v23 }
  0x13   : > { %2431 = vmatprep.subr.bf16.mxu1 %v2649_v8  ;;  %v385_v21 = vadd.s32 4294967295, %v291_v14  ;;  %2419 = vmatprep.mubr.bf16.mxu0 %v468_v22  ;;  %vm392_vm0 = vcmp.ge.s32.totalorder %v384_v20, 0  ;;  %v376_v33 = vld [vmem:[#allocation2 + $0x7] sm:$0xff]  ;;  %v386_v34 = vadd.s32 4294967295, %v298_v26  ;;  %v2887_v43 = vadd.s32 56, %v2786_v7  ;;  %v2660_v44 = vld [vmem:[%s3354_s1 + $0xb8] sm:$0xff]  }
  0x14   : > { %v2659_v39 = vld [vmem:[%s3354_s1] sm:$0xff]   ;;  %v387_v41 = vadd.s32 4294967295, %v305_v31  ;;  %v388_v46 = vadd.s32 4294967295, %v312_v36  ;;  %v389_v48 = vadd.s32 4294967295, %v319_v38  ;;  %v2661_v49 = vld [vmem:[%s3354_s1 + $0xf8] sm:$0xff]   ;;  %v326_v52 = vand.u32 7, %v2884_v42 }
  0x15   : > { %2408 = vmatpush3.bf16.msra.mxu0 %v2648_v6  ;;  %vm393_vm1 = vcmp.ge.s32.totalorder %v385_v21, 0  ;;  %vm394_vm3 = vcmp.ge.s32.totalorder %v386_v34, 0  ;;  %v2906_v50 = vld [vmem:[%s2818_s21 + $0x18] sm:$0xff]  ;;  %v2909_v51 = vld [vmem:[%s2818_s21 + $0x20] sm:$0xff]  ;;  %v333_v53 = vand.u32 7, %v2887_v43  ;;  %v2920_v55 = vld [vmem:[%s2818_s21 + $0x28] sm:$0xff] }
  0x16   : > { %2432 = vmatpush3.bf16.msra.mxu1 %v2649_v8  ;;  %2409 = vmatprep.subr.bf16.mxu0 %v2650_v9  ;;  %vm2869_vm2 = vmpackc.low %vm393_vm1, %vm392_vm0  ;;  %vm395_vm4 = vcmp.ge.s32.totalorder %v387_v41, 0  ;;  %266 = vst [vmem:[#allocation2 + $0x28] sm:$0xff] %v2906_v50  ;;  %v2923_v56 = vld [vmem:[%s2818_s21 + $0x30] sm:$0xff]  ;;  %v1080_v57 = vpack.c.bf16 %v2906_v50, %v2843_v24  ;;  %vm396_vm6 = vcmp.ge.s32.totalorder %v388_v46, 0  ;;  %vm397_vm7 = vcmp.ge.s32.totalorder %v389_v48, 0  ;;  %v2664_v2 = vld [vmem:[%s3354_s1 + $0xa8] sm:$0xff]  }
  0x17   : > { %2433 = vmatprep.subr.bf16.mxu1 %v2651_v11  ;;  %267 = vst [vmem:[#allocation2 + $0x30] sm:$0xff] %v2909_v51  ;;  %v2662_v59 = vld [vmem:[%s3354_s1 + $0xb0] sm:$0xff]   ;;  %268 = vst [vmem:[#allocation2 + $0x38] sm:$0xff] %v2920_v55  ;;  %v1081_v62 = vpack.c.bf16 %v2920_v55, %v2909_v51  ;;  %v2949_v63 = vpack.c.bf16 %v2909_v51, %v2906_v50  ;;  %v390_v0 = vadd.s32 4294967295, %v326_v52  ;;  %v391_v1 = vadd.s32 4294967295, %v333_v53  ;;  %v2665_v3 = vld [vmem:[%s3354_s1 + $0xe8] sm:$0xff]  }
  0x18   : > { %v2874_v37 = vld [vmem:[#allocation2 + $0xf] sm:$0xff]  ;;  %v2894_v45 = vld [vmem:[#allocation2 + $0x17] sm:$0xff]  ;;  %269 = vst [vmem:[#allocation2 + $0x40] sm:$0xff] %v2923_v56  ;;  %vm2941_vm5 = vmpackc.low %vm395_vm4, %vm394_vm3  ;;  %v723_v5 = vadd.s32 1, %v284_v12  ;;  %v724_v6 = vadd.s32 1, %v291_v14  ;;  %v2986_v12 = vpack.c.bf16 %v2923_v56, %v2920_v55  ;;  %v725_v41 = vadd.s32 1, %v298_v26 }
  0x19   : > { %2410 = vmatpush3.bf16.msra.mxu0 %v2650_v9  ;;  %v2051_v40 = vpack.c.bf16 %v2874_v37, %v376_v33  ;;  %v2898_v47 = vld [vmem:[#allocation2 + $0x1f] sm:$0xff]  ;;  %v2663_v60 = vld [vmem:[%s3354_s1 + $0xf0] sm:$0xff]   ;;  %vm2971_vm8 = vmpackc.low %vm397_vm7, %vm396_vm6  ;;  %vm398_vm9 = vcmp.ge.s32.totalorder %v390_v0, 0  ;;  %vm399_vm10 = vcmp.ge.s32.totalorder %v391_v1, 0  ;;  %v727_v26 = vadd.s32 1, %v312_v36 }
  0x1a   : > { %2434 = vmatpush3.bf16.msra.mxu1 %v2651_v11  ;;  %2411 = vmatprep.subr.bf16.mxu0 %v2652_v13  ;;  %v2929_v58 = vpack.c.bf16 %v2898_v47, %v2894_v45  ;;  %v715_v7 = vld [vmem:[#allocation2 + $0x9] sm:$0xff]  ;;  %vm739_vm11 = vcmp.lt.s32.totalorder %v723_v5, 8  ;;  %vm740_vm12 = vcmp.lt.s32.totalorder %v724_v6, 8  ;;  %vm3002_vm13 = vmpackc.low %vm399_vm10, %vm398_vm9  ;;  %v2667_v21 = vld [vmem:[%s3354_s1 + $0xe0] sm:$0xff]   ;;  %vm741_vm15 = vcmp.lt.s32.totalorder %v725_v41, 8 }
  0x1b   : > { %2435 = vmatprep.subr.bf16.mxu1 %v2653_v15  ;;  %2443 = vmatprep.mubr.msk.bf16.mxu1 %vm2869_vm2, %v2051_v40  ;;  %vm3014_vm14 = vmpackc.low %vm740_vm12, %vm739_vm11  ;;  %v2669_v33 = vld [vmem:[%s3354_s1 + $0xd8] sm:$0xff]   ;;  %v2671_v40 = vld [vmem:[%s3354_s1 + $0xd0] sm:$0xff]   ;;  %v728_v48 = vadd.s32 1, %v319_v38  ;;  %vm743_vm3 = vcmp.lt.s32.totalorder %v727_v26, 8  ;;  %v730_v5 = vadd.s32 1, %v333_v53 }
  0x1c   : > { %v3032_v34 = vld [vmem:[%s2818_s21 + $0x38] sm:$0xff]  ;;  %v2674_v16 = vld [vmem:[%s3354_s1 + $0x80] sm:$0xff]   ;;  %v2678_v38 = vld [vmem:[%s3354_s1 + $0x130] sm:$0xff]  }
  0x1d   : > { %2412 = vmatpush3.bf16.msra.mxu0 %v2652_v13  ;;  %v2976_v9 = vld [vmem:[#allocation2 + $0x27] sm:$0xff]  ;;  %270 = vst [vmem:[#allocation2 + $0x48] sm:$0xff] %v3032_v34  ;;  %v2677_v27 = vld [vmem:[%s3354_s1 + $0x178] sm:$0xff]   ;;  %vm744_vm4 = vcmp.lt.s32.totalorder %v728_v48, 8  ;;  %v2679_v1 = vld [vmem:[%s3354_s1 + $0x170] sm:$0xff]   ;;  %vm746_vm9 = vcmp.lt.s32.totalorder %v730_v5, 8  ;;  %v1082_v50 = vpack.c.bf16 %v3032_v34, %v2923_v56 }
  0x1e   : > { %2436 = vmatpush3.bf16.msra.mxu1 %v2653_v15  ;;  %2413 = vmatprep.subr.bf16.mxu0 %v2654_v17  ;;  %v2978_v11 = vld [vmem:[#allocation2 + $0x2f] sm:$0xff]  ;;  %v2988_v13 = vld [vmem:[#allocation2 + $0x37] sm:$0xff]  ;;  %v2675_v25 = vld [vmem:[%s3354_s1 + $0xc0] sm:$0xff]   ;;  %v2126_v0 = vpack.c.bf16 %v2976_v9, %v2898_v47 }
  0x1f   : > { %2437 = vmatprep.subr.bf16.mxu1 %v2655_v18  ;;  %v2982_v10 = vpack.c.bf16 %v2978_v11, %v2976_v9  ;;  %v2990_v14 = vld [vmem:[#allocation2 + $0x3f] sm:$0xff]  ;;  %v2992_v15 = vld [vmem:[#allocation2 + $0x11] sm:$0xff]  ;;  %v3081_v36 = vld [vmem:[#allocation2 + $0x29] sm:$0xff] }
  0x20   : > { %v2087_v22 = vpack.c.bf16 %v2992_v15, %v715_v7  ;;  %v3067_v46 = vld [vmem:[#allocation2 + $0x21] sm:$0xff]  ;;  %vm3099_vm6 = vmpackc.low %vm744_vm4, %vm743_vm3  ;;  %v3109_v6 = vld [vmem:[#allocation2 + $0x39] sm:$0xff] }
  0x21   : > { %2414 = vmatpush3.bf16.msra.mxu0 %v2654_v17  ;;  %v2666_v17 = vld [vmem:[%s3354_s1 + $0xa0] sm:$0xff]   ;;  %v2680_v42 = vld [vmem:[%s3354_s1 + $0x128] sm:$0xff]   ;;  %v2692_v41 = vld [vmem:[%s3354_s1 + $0x1b8] sm:$0xff]  }
  0x22   : > { %2438 = vmatpush3.bf16.msra.mxu1 %v2655_v18  ;;  %2415 = vmatprep.subr.bf16.mxu0 %v2656_v28  ;;  %v2999_v18 = vpack.c.bf16 %v2990_v14, %v2988_v13  ;;  %v2681_v9 = vld [vmem:[%s3354_s1 + $0x168] sm:$0xff]   ;;  %v2698_v51 = vld [vmem:[%s3354_s1 + $0x1a0] sm:$0xff]   ;;  %v2700_v56 = vld [vmem:[%s3354_s1 + $0x198] sm:$0xff]  }
  0x23   : > { %2439 = vmatprep.subr.bf16.mxu1 %v2657_v30  ;;  %v2696_v26 = vld [vmem:[%s3354_s1 + $0x1a8] sm:$0xff]   ;;  %v2699_v55 = vld [vmem:[%s3354_s1 + $0x1e0] sm:$0xff]   ;;  %v2713_v8 = vld [vmem:[%s3354_s1 + $0x210] sm:$0xff]  }
  0x24   : > { %v3121_v43 = vld [vmem:[#allocation2 + $0x41] sm:$0xff] }
  0x25   : > { %2416 = vmatpush3.bf16.msra.mxu0 %v2656_v28  ;;  %v3123_v53 = vld [vmem:[#allocation2 + $0x47] sm:$0xff] }
  0x26   : > { %2440 = vmatpush3.bf16.msra.mxu1 %v2657_v30  ;;  %2417 = vmatprep.subr.bf16.mxu0 %v2658_v32  ;;  %v2123_v30 = vpack.c.bf16 %v2894_v45, %v2874_v37  ;;  %v3039_v37 = vpack.c.bf16 %v2724_v4, %v3032_v34  ;;  %v2672_v4 = vld [vmem:[%s3354_s1 + $0x88] sm:$0xff]   ;;  %v2702_v34 = vld [vmem:[%s3354_s1 + $0x190] sm:$0xff]   ;;  %v2707_v48 = vld [vmem:[%s3354_s1 + $0x1c0] sm:$0xff]  }
  0x27   : > { %2441 = vmatprep.subr.bf16.mxu1 %v2659_v39  ;;  %v2673_v45 = vld [vmem:[%s3354_s1 + $0xc8] sm:$0xff]   ;;  %v2711_v61 = vld [vmem:[%s3354_s1 + $0x220] sm:$0xff]  }
  0x28   : > { %v2697_v24 = vld [vmem:[%s3354_s1 + $0x1e8] sm:$0xff]  }
  0x29   : > { %2418 = vmatpush3.bf16.msra.mxu0 %v2658_v32  ;;  %v2668_v32 = vld [vmem:[%s3354_s1 + $0x98] sm:$0xff]   ;;  %v2704_v35 = vld [vmem:[%s3354_s1 + $0x188] sm:$0xff]  }
  0x2a   : > { %2442 = vmatpush3.bf16.msra.mxu1 %v2659_v39  ;;  %2451 = vmatprep.subr.bf16.mxu0 %v2660_v44  ;;  %v2670_v39 = vld [vmem:[%s3354_s1 + $0x90] sm:$0xff]  }
  0x2b   : > { %2475 = vmatprep.subr.bf16.mxu1 %v2661_v49 }
  0x2c   : > { %2420 = vmatmul.mubr.bf16.vlgmr.msra.gmra.mxu0 %v2915_v54 }
  0x2d   : > { %2444 = vmatmul.mubr.msk.bf16.vlgmr.msra.gmra.mxu1 %vm2941_vm5, %v2929_v58  ;;  %2452 = vmatpush3.bf16.msra.mxu0 %v2660_v44  ;;  %v726_v44 = vadd.s32 1, %v305_v31  ;;  %v3065_v31 = vld [vmem:[#allocation2 + $0x19] sm:$0xff] }
  0x2e   : > { %2476 = vmatpush3.bf16.msra.mxu1 %v2661_v49  ;;  %2453 = vmatprep.subr.bf16.mxu0 %v2662_v59  ;;  %v3085_v29 = vpack.c.bf16 %v3067_v46, %v3065_v31 }
  0x2f   : > { %2477 = vmatprep.subr.bf16.mxu1 %v2663_v60  ;;  %2423 = vmatprep.mubr.bf16.mxu0 %v2949_v63  ;;  %vm742_vm0 = vcmp.lt.s32.totalorder %v726_v44, 8  ;;  %v2693_v44 = vld [vmem:[%s3354_s1 + $0x1f8] sm:$0xff]  }
  0x30   : > { %2447 = vmatprep.mubr.msk.bf16.mxu1 %vm2971_vm8, %v2982_v10  ;;  %vm3071_vm1 = vmpackc.low %vm742_vm0, %vm741_vm15 }
  0x31   : > { %2454 = vmatpush3.bf16.msra.mxu0 %v2662_v59  ;;  %v2676_v59 = vld [vmem:[%s3354_s1 + $0x138] sm:$0xff]  }
  0x32   : > { %2478 = vmatpush3.bf16.msra.mxu1 %v2663_v60  ;;  %2455 = vmatprep.subr.bf16.mxu0 %v2664_v2  ;;  %v3090_v60 = vld [vmem:[#allocation2 + $0x31] sm:$0xff] }
  0x33   : > { %2479 = vmatprep.subr.bf16.mxu1 %v2665_v3  ;;  %v3107_v47 = vpack.c.bf16 %v3090_v60, %v3081_v36 }
  0x34   : > { %2424 = vmatmul.mubr.bf16.gmra.mxu0 %v2986_v12 }
  0x35   : > { %2456 = vmatpush3.bf16.msra.mxu0 %v2664_v2  ;;  %2448 = vmatmul.mubr.msk.bf16.gmra.mxu1 %vm3002_vm13, %v2999_v18  ;;  %v729_v2 = vadd.s32 1, %v326_v52  ;;  %v2129_v52 = vpack.c.bf16 %v2988_v13, %v2978_v11  ;;  %v3133_v11 = vpack.c.bf16 %v3121_v43, %v3109_v6  ;;  %v2132_v13 = vpack.c.bf16 %v3123_v53, %v2990_v14 }
  0x36   : > { %2480 = vmatpush3.bf16.msra.mxu1 %v2665_v3  ;;  %2457 = vmatprep.subr.bf16.mxu0 %v2666_v17  ;;  %v2183_v14 = vpack.c.bf16 %v3065_v31, %v2992_v15  ;;  %v2687_v15 = vld [vmem:[%s3354_s1 + $0x150] sm:$0xff]  }
  0x37   : > { %2481 = vmatprep.subr.bf16.mxu1 %v2667_v21  ;;  %2467 = vmatprep.mubr.msk.bf16.mxu0 %vm3014_vm14, %v2087_v22  ;;  %vm745_vm7 = vcmp.lt.s32.totalorder %v729_v2, 8  ;;  %v1079_v22 = vpack.c.bf16 %v2840_v23, %v2830_v19  ;;  %v2685_v19 = vld [vmem:[%s3354_s1 + $0x158] sm:$0xff]   ;;  %v2686_v23 = vld [vmem:[%s3354_s1 + $0x110] sm:$0xff]  }
  0x38   : > { %2491 = vmatprep.mubr.msk.bf16.mxu1 %vm2869_vm2, %v2123_v30  ;;  %vm3137_vm10 = vmpackc.low %vm746_vm9, %vm745_vm7  ;;  %v2684_v30 = vld [vmem:[%s3354_s1 + $0x118] sm:$0xff]   ;;  %v3208_v31 = vld [vmem:[#allocation2 + $0x49] sm:$0xff] }
  0x39   : > { %2458 = vmatpush3.bf16.msra.mxu0 %v2666_v17  ;;  %v2682_v17 = vld [vmem:[%s3354_s1 + $0x120] sm:$0xff]  }
  0x3a   : > { %2482 = vmatpush3.bf16.msra.mxu1 %v2667_v21  ;;  %2459 = vmatprep.subr.bf16.mxu0 %v2668_v32  ;;  %v2683_v21 = vld [vmem:[%s3354_s1 + $0x160] sm:$0xff]  }
  0x3b   : > { %2483 = vmatprep.subr.bf16.mxu1 %v2669_v33 }
  0x3d   : > { %2460 = vmatpush3.bf16.msra.mxu0 %v2668_v32  ;;  %v2688_v32 = vld [vmem:[%s3354_s1 + $0x108] sm:$0xff]  }
  0x3e   : > { %2484 = vmatpush3.bf16.msra.mxu1 %v2669_v33  ;;  %2461 = vmatprep.subr.bf16.mxu0 %v2670_v39  ;;  %v2689_v33 = vld [vmem:[%s3354_s1 + $0x148] sm:$0xff]  }
  0x3f   : > { %2485 = vmatprep.subr.bf16.mxu1 %v2671_v40 }
  0x41   : > { %2462 = vmatpush3.bf16.msra.mxu0 %v2670_v39  ;;  %v2690_v39 = vld [vmem:[%s3354_s1 + $0x100] sm:$0xff]  }
  0x42   : > { %2486 = vmatpush3.bf16.msra.mxu1 %v2671_v40  ;;  %2463 = vmatprep.subr.bf16.mxu0 %v2672_v4  ;;  %v2691_v40 = vld [vmem:[%s3354_s1 + $0x140] sm:$0xff]  }
  0x43   : > { %2487 = vmatprep.subr.bf16.mxu1 %v2673_v45 }
  0x45   : > { %2464 = vmatpush3.bf16.msra.mxu0 %v2672_v4  ;;  %v2186_v4 = vpack.c.bf16 %v3081_v36, %v3067_v46  ;;  %v2703_v46 = vld [vmem:[%s3354_s1 + $0x1d0] sm:$0xff]  }
  0x46   : > { %2488 = vmatpush3.bf16.msra.mxu1 %v2673_v45  ;;  %2465 = vmatprep.subr.bf16.mxu0 %v2674_v16  ;;  %v2694_v45 = vld [vmem:[%s3354_s1 + $0x1b0] sm:$0xff]  }
  0x47   : > { %2489 = vmatprep.subr.bf16.mxu1 %v2675_v25  ;;  %v1386_v36 = vld [vmem:[#allocation2 + $0x4f] sm:$0xff] }
  0x49   : > { %2466 = vmatpush3.bf16.msra.mxu0 %v2674_v16  ;;  %v2695_v16 = vld [vmem:[%s3354_s1 + $0x1f0] sm:$0xff]  }
  0x4a   : > { %2490 = vmatpush3.bf16.msra.mxu1 %v2675_v25  ;;  %2499 = vmatprep.subr.bf16.mxu0 %v2676_v59  ;;  %v2189_v25 = vpack.c.bf16 %v3109_v6, %v3090_v60  ;;  %v2228_v60 = vpack.c.bf16 %v1386_v36, %v3123_v53 }
  0x4b   : > { %2523 = vmatprep.subr.bf16.mxu1 %v2677_v27 }
  0x4c   : > { %2468 = vmatmul.mubr.msk.bf16.vlgmr.msra.gmra.mxu0 %vm3071_vm1, %v3085_v29 }
  0x4d   : > { %2492 = vmatmul.mubr.msk.bf16.vlgmr.msra.gmra.mxu1 %vm2941_vm5, %v2126_v0  ;;  %2500 = vmatpush3.bf16.msra.mxu0 %v2676_v59  ;;  %v2708_v59 = vld [vmem:[%s3354_s1 + $0x238] sm:$0xff]  }
  0x4e   : > { %2524 = vmatpush3.bf16.msra.mxu1 %v2677_v27  ;;  %2501 = vmatprep.subr.bf16.mxu0 %v2678_v38  ;;  %v2709_v27 = vld [vmem:[%s3354_s1 + $0x230] sm:$0xff]  }
  0x4f   : > { %2525 = vmatprep.subr.bf16.mxu1 %v2679_v1  ;;  %2471 = vmatprep.mubr.msk.bf16.mxu0 %vm3099_vm6, %v3107_v47 }
  0x50   : > { %2495 = vmatprep.mubr.msk.bf16.mxu1 %vm2971_vm8, %v2129_v52 }
  0x51   : > { %2502 = vmatpush3.bf16.msra.mxu0 %v2678_v38  ;;  %v2710_v38 = vld [vmem:[%s3354_s1 + $0x228] sm:$0xff]  }
  0x52   : > { %2526 = vmatpush3.bf16.msra.mxu1 %v2679_v1  ;;  %2503 = vmatprep.subr.bf16.mxu0 %v2680_v42 }
  0x53   : > { %2527 = vmatprep.subr.bf16.mxu1 %v2681_v9 }
  0x54   : > { %2472 = vmatmul.mubr.msk.bf16.gmra.mxu0 %vm3137_vm10, %v3133_v11 }
  0x55   : > { %2504 = vmatpush3.bf16.msra.mxu0 %v2680_v42  ;;  %2496 = vmatmul.mubr.msk.bf16.gmra.mxu1 %vm3002_vm13, %v2132_v13 }
  0x56   : > { %2528 = vmatpush3.bf16.msra.mxu1 %v2681_v9  ;;  %2505 = vmatprep.subr.bf16.mxu0 %v2682_v17 }
  0x57   : > { %2529 = vmatprep.subr.bf16.mxu1 %v2683_v21  ;;  %2515 = vmatprep.mubr.bf16.mxu0 %v1079_v22 }
  0x58   : > { %2539 = vmatprep.mubr.msk.bf16.mxu1 %vm3014_vm14, %v2183_v14 }
  0x59   : > { %2506 = vmatpush3.bf16.msra.mxu0 %v2682_v17 }
  0x5a   : > { %2530 = vmatpush3.bf16.msra.mxu1 %v2683_v21  ;;  %2507 = vmatprep.subr.bf16.mxu0 %v2684_v30 }
  0x5b   : > { %2531 = vmatprep.subr.bf16.mxu1 %v2685_v19 }
  0x5d   : > { %2508 = vmatpush3.bf16.msra.mxu0 %v2684_v30 }
  0x5e   : > { %2532 = vmatpush3.bf16.msra.mxu1 %v2685_v19  ;;  %2509 = vmatprep.subr.bf16.mxu0 %v2686_v23 }
  0x5f   : > { %2533 = vmatprep.subr.bf16.mxu1 %v2687_v15 }
  0x61   : > { %2510 = vmatpush3.bf16.msra.mxu0 %v2686_v23 }
  0x62   : > { %2534 = vmatpush3.bf16.msra.mxu1 %v2687_v15  ;;  %2511 = vmatprep.subr.bf16.mxu0 %v2688_v32 }
  0x63   : > { %2535 = vmatprep.subr.bf16.mxu1 %v2689_v33 }
  0x65   : > { %2512 = vmatpush3.bf16.msra.mxu0 %v2688_v32 }
  0x66   : > { %2536 = vmatpush3.bf16.msra.mxu1 %v2689_v33  ;;  %2513 = vmatprep.subr.bf16.mxu0 %v2690_v39 }
  0x67   : > { %2537 = vmatprep.subr.bf16.mxu1 %v2691_v40 }
  0x69   : > { %2514 = vmatpush3.bf16.msra.mxu0 %v2690_v39 }
  0x6a   : > { %2538 = vmatpush3.bf16.msra.mxu1 %v2691_v40  ;;  %2547 = vmatprep.subr.bf16.mxu0 %v2692_v41 }
  0x6b   : > { %2571 = vmatprep.subr.bf16.mxu1 %v2693_v44 }
  0x6c   : > { %2516 = vmatmul.mubr.bf16.vlgmr.msra.gmra.mxu0 %v1080_v57  ;;  %v2192_v57 = vpack.c.bf16 %v3208_v31, %v3121_v43 }
  0x6d   : > { %2540 = vmatmul.mubr.msk.bf16.vlgmr.msra.gmra.mxu1 %vm3071_vm1, %v2186_v4  ;;  %2548 = vmatpush3.bf16.msra.mxu0 %v2692_v41 }
  0x6e   : > { %2572 = vmatpush3.bf16.msra.mxu1 %v2693_v44  ;;  %2549 = vmatprep.subr.bf16.mxu0 %v2694_v45 }
  0x6f   : > { %2573 = vmatprep.subr.bf16.mxu1 %v2695_v16  ;;  %2519 = vmatprep.mubr.bf16.mxu0 %v1081_v62  ;;  %v2701_v62 = vld [vmem:[%s3354_s1 + $0x1d8] sm:$0xff]  }
  0x70   : > { %2543 = vmatprep.mubr.msk.bf16.mxu1 %vm3099_vm6, %v2189_v25 }
  0x71   : > { %2550 = vmatpush3.bf16.msra.mxu0 %v2694_v45 }
  0x72   : > { %2574 = vmatpush3.bf16.msra.mxu1 %v2695_v16  ;;  %2551 = vmatprep.subr.bf16.mxu0 %v2696_v26 }
  0x73   : > { %2575 = vmatprep.subr.bf16.mxu1 %v2697_v24 }
  0x74   : > { %2520 = vmatmul.mubr.bf16.gmra.mxu0 %v1082_v50 }
  0x75   : > { %2552 = vmatpush3.bf16.msra.mxu0 %v2696_v26  ;;  %2544 = vmatmul.mubr.msk.bf16.gmra.mxu1 %vm3137_vm10, %v2192_v57 }
  0x76   : > { %2576 = vmatpush3.bf16.msra.mxu1 %v2697_v24  ;;  %2553 = vmatprep.subr.bf16.mxu0 %v2698_v51 }
  0x77   : > { %2577 = vmatprep.subr.bf16.mxu1 %v2699_v55  ;;  %2563 = vmatprep.mubr.msk.bf16.mxu0 %vm2869_vm2, %v2929_v58  ;;  %v2706_v58 = vld [vmem:[%s3354_s1 + $0x180] sm:$0xff]  }
  0x78   : > { %2587 = vmatprep.mubr.bf16.mxu1 %v2915_v54  ;;  %v2705_v54 = vld [vmem:[%s3354_s1 + $0x1c8] sm:$0xff]  }
  0x79   : > { %2554 = vmatpush3.bf16.msra.mxu0 %v2698_v51 }
  0x7a   : > { %2578 = vmatpush3.bf16.msra.mxu1 %v2699_v55  ;;  %2555 = vmatprep.subr.bf16.mxu0 %v2700_v56 }
  0x7b   : > { %2579 = vmatprep.subr.bf16.mxu1 %v2701_v62 }
  0x7d   : > { %2556 = vmatpush3.bf16.msra.mxu0 %v2700_v56 }
  0x7e   : > { %2580 = vmatpush3.bf16.msra.mxu1 %v2701_v62  ;;  %2557 = vmatprep.subr.bf16.mxu0 %v2702_v34 }
  0x7f   : > { %2581 = vmatprep.subr.bf16.mxu1 %v2703_v46 }
  0x81   : > { %2558 = vmatpush3.bf16.msra.mxu0 %v2702_v34 }
  0x82   : > { %2582 = vmatpush3.bf16.msra.mxu1 %v2703_v46  ;;  %2559 = vmatprep.subr.bf16.mxu0 %v2704_v35 }
  0x83   : > { %2583 = vmatprep.subr.bf16.mxu1 %v2705_v54 }
  0x85   : > { %2560 = vmatpush3.bf16.msra.mxu0 %v2704_v35 }
  0x86   : > { %2584 = vmatpush3.bf16.msra.mxu1 %v2705_v54  ;;  %2561 = vmatprep.subr.bf16.mxu0 %v2706_v58 }
  0x87   : > { %2585 = vmatprep.subr.bf16.mxu1 %v2707_v48 }
  0x89   : > { %2562 = vmatpush3.bf16.msra.mxu0 %v2706_v58 }
  0x8a   : > { %2586 = vmatpush3.bf16.msra.mxu1 %v2707_v48  ;;  %2595 = vmatprep.subr.bf16.mxu0 %v2708_v59 }
  0x8b   : > { %2619 = vmatprep.subr.bf16.mxu1 %v2708_v59 }
  0x8c   : > { %2564 = vmatmul.mubr.msk.bf16.vlgmr.msra.gmra.mxu0 %vm2941_vm5, %v2982_v10  ;;  %v2714_v10 = vld [vmem:[%s3354_s1 + $0x208] sm:$0xff]  }
  0x8d   : > { %2588 = vmatmul.mubr.bf16.vlgmr.msra.gmra.mxu1 %v2949_v63  ;;  %2596 = vmatpush3.bf16.msra.mxu0 %v2708_v59  ;;  %v2712_v63 = vld [vmem:[%s3354_s1 + $0x218] sm:$0xff]  }
  0x8e   : > { %2627 = vmatpush3.bf16.msra.mxu1 %v2708_v59  ;;  %2597 = vmatprep.subr.bf16.mxu0 %v2709_v27 }
  0x8f   : > { %2620 = vmatprep.subr.bf16.mxu1 %v2709_v27  ;;  %2567 = vmatprep.mubr.msk.bf16.mxu0 %vm2971_vm8, %v2999_v18  ;;  %v1694_v18 = vld [vmem:[#allocation2 + $0x51] sm:$0xff] }
  0x90   : > { %2591 = vmatprep.mubr.bf16.mxu1 %v2986_v12  ;;  %v2715_v12 = vld [vmem:[%s3354_s1 + $0x200] sm:$0xff]   ;;  %v2288_v20 = vpack.c.bf16 %v1694_v18, %v3208_v31 }
  0x91   : > { %2598 = vmatpush3.bf16.msra.mxu0 %v2709_v27 }
  0x92   : > { %2628 = vmatpush3.bf16.msra.mxu1 %v2709_v27  ;;  %2599 = vmatprep.subr.bf16.mxu0 %v2710_v38 }
  0x93   : > { %2621 = vmatprep.subr.bf16.mxu1 %v2710_v38 }
  0x94   : > { %2568 = vmatmul.mubr.msk.bf16.gmra.mxu0 %vm3002_vm13, %v2228_v60 }
  0x95   : > { %2600 = vmatpush3.bf16.msra.mxu0 %v2710_v38  ;;  %2592 = vmatmul.mubr.bf16.gmra.mxu1 %v3039_v37 }
  0x96   : > { %2629 = vmatpush3.bf16.msra.mxu1 %v2710_v38  ;;  %2601 = vmatprep.subr.bf16.mxu0 %v2711_v61 }
  0x97   : > { %2622 = vmatprep.subr.bf16.mxu1 %v2711_v61  ;;  %2611 = vmatprep.mubr.msk.bf16.mxu0 %vm3014_vm14, %v3085_v29 }
  0x98   : > { %2615 = vmatprep.mubr.msk.bf16.mxu1 %vm3099_vm6, %v3133_v11 }
  0x99   : > { %2602 = vmatpush3.bf16.msra.mxu0 %v2711_v61 }
  0x9a   : > { %2630 = vmatpush3.bf16.msra.mxu1 %v2711_v61  ;;  %2603 = vmatprep.subr.bf16.mxu0 %v2712_v63 }
  0x9b   : > { %2623 = vmatprep.subr.bf16.mxu1 %v2712_v63 }
  0x9d   : > { %2604 = vmatpush3.bf16.msra.mxu0 %v2712_v63 }
  0x9e   : > { %2631 = vmatpush3.bf16.msra.mxu1 %v2712_v63  ;;  %2605 = vmatprep.subr.bf16.mxu0 %v2713_v8 }
  0x9f   : > { %2624 = vmatprep.subr.bf16.mxu1 %v2713_v8 }
  0xa1   : > { %2606 = vmatpush3.bf16.msra.mxu0 %v2713_v8 }
  0xa2   : > { %2632 = vmatpush3.bf16.msra.mxu1 %v2713_v8  ;;  %2607 = vmatprep.subr.bf16.mxu0 %v2714_v10 }
  0xa3   : > { %2625 = vmatprep.subr.bf16.mxu1 %v2714_v10 }
  0xa5   : > { %2608 = vmatpush3.bf16.msra.mxu0 %v2714_v10 }
  0xa6   : > { %2633 = vmatpush3.bf16.msra.mxu1 %v2714_v10  ;;  %2609 = vmatprep.subr.bf16.mxu0 %v2715_v12 }
  0xa7   : > { %2626 = vmatprep.subr.bf16.mxu1 %v2715_v12 }
  0xa9   : > { %2610 = vmatpush3.bf16.msra.mxu0 %v2715_v12 }
  0xaa   : > { %2634 = vmatpush3.bf16.msra.mxu1 %v2715_v12 }
  0xac   : > { %2612 = vmatmul.mubr.msk.bf16.vlgmr.msra.gmra.mxu0 %vm3071_vm1, %v3107_v47 }
  0xad   : > { %2616 = vmatmul.mubr.msk.bf16.vlgmr.msra.gmra.mxu1 %vm3137_vm10, %v2288_v20 }
  0xec   : > { %v2421_v28 = vpop.f32.mrf.mxu0 }
  0xed   : > { %v2445_v37 = vpop.f32.mrf.mxu1 }
  0xee   : > { %v571_v29 = vpop.f32.mrf.mxu0  ;;  %v693_v36 = vadd.f32 %v2445_v37, %v2421_v28 }
  0xef   : > { %v684_v0 = vpop.f32.mrf.mxu1 }
  0xf0   : > { %v2422_v1 = vpop.f32.mrf.mxu0  ;;  %v685_v61 = vadd.f32 %v684_v0, %v571_v29 }
  0xf1   : > { %v2446_v2 = vpop.f32.mrf.mxu1 }
  0xf2   : > { %v574_v3 = vpop.f32.mrf.mxu0  ;;  %v696_v18 = vadd.f32 %v2446_v2, %v2422_v1 }
  0xf3   : > { %v687_v5 = vpop.f32.mrf.mxu1 }
  0xf4   : > { %v2425_v6 = vpop.f32.mrf.mxu0 }
  0xf5   : > { %v2449_v42 = vpop.f32.mrf.mxu1 }
  0xf6   : > { %v587_v52 = vpop.f32.mrf.mxu0  ;;  %v709_v38 = vadd.f32 %v2449_v42, %v2425_v6 }
  0xf7   : > { %v700_v43 = vpop.f32.mrf.mxu1 }
  0xf8   : > { %v2426_v53 = vpop.f32.mrf.mxu0  ;;  %v701_v10 = vadd.f32 %v700_v43, %v587_v52 }
  0xf9   : > { %v2450_v9 = vpop.f32.mrf.mxu1 }
  0xfa   : > { %v590_v11 = vpop.f32.mrf.mxu0 }
  0xfb   : > { %v703_v49 = vpop.f32.mrf.mxu1 }
  0xfc   : > { %v704_v6 = vadd.f32 %v703_v49, %v590_v11 }
 0x10c   : > { %v2469_v47 = vpop.f32.mrf.mxu0 }
 0x10d   : > { %v2493_v13 = vpop.f32.mrf.mxu1  ;;  %v915_v63 = vadd.f32 %v2469_v47, %v693_v36 }
 0x10e   : > { %v882_v7 = vpop.f32.mrf.mxu0 }
 0x10f   : > { %v1040_v17 = vpop.f32.mrf.mxu1  ;;  %v913_v20 = vadd.f32 %v882_v7, %v685_v61 }
 0x110   : > { %v2470_v21 = vpop.f32.mrf.mxu0 }
 0x111   : > { %v2494_v22 = vpop.f32.mrf.mxu1  ;;  %v916_v28 = vadd.f32 %v2470_v21, %v696_v18  ;;  %v1071_v29 = vadd.f32 %v1040_v17, %v913_v20 }
 0x112   : > { %v885_v14 = vpop.f32.mrf.mxu0 }
 0x113   : > { %v3306_v30 = vpop.f32.mrf.mxu1 }
 0x114   : > { %3376 = vst [vmem:[#allocation3_spill] sm:$0xff] %v3306_v30  ;;  %v2473_v19 = vpop.f32.mrf.mxu0 }
 0x115   : > { %v2497_v23 = vpop.f32.mrf.mxu1  ;;  %v919_v12 = vadd.f32 %v2473_v19, %v709_v38  ;;  %v1074_v38 = vadd.f32 %v2494_v22, %v916_v28 }
 0x116   : > { %v898_v15 = vpop.f32.mrf.mxu0 }
 0x117   : > { %v1056_v32 = vpop.f32.mrf.mxu1  ;;  %v1077_v42 = vadd.f32 %v2497_v23, %v919_v12 }
 0x118   : > { %v2474_v33 = vpop.f32.mrf.mxu0 }
 0x119   : > { %v2498_v39 = vpop.f32.mrf.mxu1 }
 0x11a   : > { %v901_v40 = vpop.f32.mrf.mxu0 }
 0x11b   : > { %v1059_v41 = vpop.f32.mrf.mxu1  ;;  %v918_v43 = vadd.f32 %v901_v40, %v704_v6  ;;  %v3382_v7 = vld [vmem:[#allocation3_spill] sm:$0xff] }
 0x11d   : > { %v1076_v21 = vadd.f32 %v1059_v41, %v918_v43 }
 0x12c   : > { %v2517_v44 = vpop.f32.mrf.mxu0 }
 0x12d   : > { %v2541_v4 = vpop.f32.mrf.mxu1 }
 0x12e   : > { %v1182_v45 = vpop.f32.mrf.mxu0 }
 0x12f   : > { %v1340_v16 = vpop.f32.mrf.mxu1  ;;  %v1213_v1 = vadd.f32 %v1182_v45, %v1071_v29 }
 0x130   : > { %v2518_v25 = vpop.f32.mrf.mxu0 }
 0x131   : > { %v3308_v26 = vpop.f32.mrf.mxu1  ;;  %v1371_v17 = vadd.f32 %v1340_v16, %v1213_v1 }
 0x132   : > { %3377 = vst [vmem:[#allocation4_spill] sm:$0xff] %v3308_v26  ;;  %v1185_v31 = vpop.f32.mrf.mxu0  ;;  %v917_v26 = vadd.f32 %v898_v15, %v701_v10 }
 0x133   : > { %v3310_v24 = vpop.f32.mrf.mxu1 }
 0x134   : > { %3378 = vst [vmem:[#allocation5_spill] sm:$0xff] %v3310_v24  ;;  %v2521_v50 = vpop.f32.mrf.mxu0  ;;  %v712_v24 = vadd.f32 %v2450_v9, %v2426_v53 }
 0x135   : > { %v2545_v57 = vpop.f32.mrf.mxu1  ;;  %v1219_v52 = vadd.f32 %v2521_v50, %v1077_v42 }
 0x136   : > { %v1198_v51 = vpop.f32.mrf.mxu0  ;;  %v920_v0 = vadd.f32 %v2474_v33, %v712_v24 }
 0x137   : > { %v1356_v55 = vpop.f32.mrf.mxu1  ;;  %v1377_v11 = vadd.f32 %v2545_v57, %v1219_v52 }
 0x138   : > { %v2522_v56 = vpop.f32.mrf.mxu0  ;;  %v1078_v53 = vadd.f32 %v2498_v39, %v920_v0 }
 0x139   : > { %v2546_v62 = vpop.f32.mrf.mxu1  ;;  %v3383_v22 = vld [vmem:[#allocation4_spill] sm:$0xff] }
 0x13a   : > { %v1201_v34 = vpop.f32.mrf.mxu0  ;;  %v1220_v49 = vadd.f32 %v2522_v56, %v1078_v53 }
 0x13b   : > { %v1359_v46 = vpop.f32.mrf.mxu1  ;;  %v1218_v40 = vadd.f32 %v1201_v34, %v1076_v21 }
 0x13c   : > { %v1378_v39 = vadd.f32 %v2546_v62, %v1220_v49 }
 0x13d   : > { %v1376_v56 = vadd.f32 %v1359_v46, %v1218_v40 }
 0x14c   : > { %v2565_v35 = vpop.f32.mrf.mxu0 }
 0x14d   : > { %v2589_v54 = vpop.f32.mrf.mxu1 }
 0x14e   : > { %v1498_v58 = vpop.f32.mrf.mxu0 }
 0x14f   : > { %v3312_v48 = vpop.f32.mrf.mxu1 }
 0x150   : > { %3379 = vst [vmem:[#allocation6_spill] sm:$0xff] %v3312_v48  ;;  %v2566_v59 = vpop.f32.mrf.mxu0  ;;  %v688_v48 = vadd.f32 %v687_v5, %v574_v3 }
 0x151   : > { %v3314_v27 = vpop.f32.mrf.mxu1 }
 0x152   : > { %3380 = vst [vmem:[#allocation7_spill] sm:$0xff] %v3314_v27  ;;  %v1501_v60 = vpop.f32.mrf.mxu0  ;;  %v1073_v27 = vadd.f32 %v2493_v13, %v915_v63  ;;  %v914_v36 = vadd.f32 %v885_v14, %v688_v48  ;;  %v1216_v13 = vadd.f32 %v2518_v25, %v1074_v38 }
 0x153   : > { %v3316_v8 = vpop.f32.mrf.mxu1 }
 0x154   : > { %3381 = vst [vmem:[#allocation8_spill] sm:$0xff] %v3316_v8  ;;  %v2569_v30 = vpop.f32.mrf.mxu0  ;;  %v1215_v47 = vadd.f32 %v2517_v44, %v1073_v27  ;;  %v1075_v8 = vadd.f32 %v1056_v32, %v917_v26  ;;  %v1072_v3 = vadd.f32 %v3382_v7, %v914_v36  ;;  %v1374_v45 = vadd.f32 %v3383_v22, %v1216_v13 }
 0x155   : > { %v2593_v37 = vpop.f32.mrf.mxu1  ;;  %v1535_v44 = vadd.f32 %v2569_v30, %v1377_v11  ;;  %v1529_v26 = vadd.f32 %v1498_v58, %v1371_v17  ;;  %v2290_v30 = vld [vmem:[%s3355_s2] ss:$0 sm:$0xff] }
 0x156   : > { %v1514_v19 = vpop.f32.mrf.mxu0  ;;  %v1217_v9 = vadd.f32 %v1198_v51, %v1075_v8  ;;  %v1373_v5 = vadd.f32 %v2541_v4, %v1215_v47  ;;  %v1214_v14 = vadd.f32 %v1185_v31, %v1072_v3  ;;  %v3384_v51 = vld [vmem:[#allocation5_spill] sm:$0xff]  ;;  %v1532_v25 = vadd.f32 %v2566_v59, %v1374_v45 }
 0x157   : > { %v1664_v2 = vpop.f32.mrf.mxu1  ;;  %v1685_v16 = vadd.f32 %v2593_v37, %v1535_v44 }
 0x158   : > { %v2570_v23 = vpop.f32.mrf.mxu0  ;;  %v1531_v15 = vadd.f32 %v2565_v35, %v1373_v5  ;;  %v1375_v33 = vadd.f32 %v1356_v55, %v1217_v9  ;;  %v1372_v4 = vadd.f32 %v3384_v51, %v1214_v14  ;;  %v3385_v55 = vld [vmem:[#allocation6_spill] sm:$0xff] }
 0x159   : > { %v2594_v32 = vpop.f32.mrf.mxu1  ;;  %v1536_v31 = vadd.f32 %v2570_v23, %v1378_v39  ;;  %v1679_v34 = vadd.f32 %v3385_v55, %v1529_v26  ;;  %v3386_v59 = vld [vmem:[#allocation7_spill] sm:$0xff] }
 0x15a   : > { %v1533_v24 = vadd.f32 %v1514_v19, %v1375_v33  ;;  %v1517_v50 = vpop.f32.mrf.mxu0  ;;  %v1681_v41 = vadd.f32 %v2589_v54, %v1531_v15  ;;  %v1530_v58 = vadd.f32 %v1501_v60, %v1372_v4  ;;  %v1682_v63 = vadd.f32 %v3386_v59, %v1532_v25 }
 0x15b   : > { %v1667_v57 = vpop.f32.mrf.mxu1  ;;  %v1534_v61 = vadd.f32 %v1517_v50, %v1376_v56  ;;  %v1686_v12 = vadd.f32 %v2594_v32, %v1536_v31  ;;  %v3387_v37 = vld [vmem:[#allocation8_spill] sm:$0xff] }
 0x15c   : > { %v1683_v27 = vadd.f32 %v1664_v2, %v1533_v24  ;;  %v1680_v6 = vadd.f32 %v3387_v37, %v1530_v58 }
 0x15d   : > { %v1684_v36 = vadd.f32 %v1667_v57, %v1534_v61 }
 0x16c   : > { %v2613_v35 = vpop.f32.mrf.mxu0 }
 0x16d   : > { %v1839_v62 = vadd.f32 %v2613_v35, %v1681_v41  ;;  %v2617_v48 = vpop.f32.mrf.mxu1 }
 0x16e   : > { %v1843_v46 = vadd.f32 %v2617_v48, %v1685_v16  ;;  %v1806_v54 = vpop.f32.mrf.mxu0 }
 0x16f   : > { %v1854_v8 = vadd.f32 %v2290_v30, %v1839_v62  ;;  %v1837_v10 = vadd.f32 %v1806_v54, %v1679_v34  ;;  %v1822_v60 = vpop.f32.mrf.mxu1 }
 0x170   : > { %v1858_v18 = vadd.f32 %v2290_v30, %v1843_v46  ;;  %v1841_v20 = vadd.f32 %v1822_v60, %v1683_v27  ;;  %v2614_v28 = vpop.f32.mrf.mxu0 }
 0x171   : > { %1862 = vst [vmem:[%s3330_s16 + $0x10] sm:$0xff] %v1854_v8  ;;  %v1852_v42 = vadd.f32 %v2290_v30, %v1837_v10  ;;  %v1840_v0 = vadd.f32 %v2614_v28, %v1682_v63  ;;  %v2618_v29 = vpop.f32.mrf.mxu1  ;;  %v1884_v21 = vmul.f32 %v1854_v8, %v1854_v8 }
 0x172   : > { %1866 = vst [vmem:[%s3330_s16 + $0x30] sm:$0xff] %v1858_v18  ;;  %v1856_v47 = vadd.f32 %v2290_v30, %v1841_v20  ;;  %v1844_v43 = vadd.f32 %v2618_v29, %v1686_v12  ;;  %v1809_v52 = vpop.f32.mrf.mxu0  ;;  %v1888_v45 = vmul.f32 %v1858_v18, %v1858_v18 }
 0x173   : > { %1860 = vst [vmem:[%s3330_s16] sm:$0xff] %v1852_v42  ;;  %v1855_v19 = vadd.f32 %v2290_v30, %v1840_v0  ;;  %v1838_v38 = vadd.f32 %v1809_v52, %v1680_v6  ;;  %v1825_v1 = vpop.f32.mrf.mxu1  ;;  %v1882_v3 = vmul.f32 %v1852_v42, %v1852_v42 }
 0x174   : > { %1864 = vst [vmem:[%s3330_s16 + $0x20] sm:$0xff] %v1856_v47  ;;  %v1859_v2 = vadd.f32 %v2290_v30, %v1844_v43  ;;  %v1842_v53 = vadd.f32 %v1825_v1, %v1684_v36  ;;  %v1886_v15 = vmul.f32 %v1856_v47, %v1856_v47 }
 0x175   : > { %1863 = vst [vmem:[%s3330_s16 + $0x18] sm:$0xff] %v1855_v19  ;;  %v1853_v9 = vadd.f32 %v2290_v30, %v1838_v38  ;;  %v1885_v23 = vmul.f32 %v1855_v19, %v1855_v19 }
 0x176   : > { %1867 = vst [vmem:[%s3330_s16 + $0x38] sm:$0xff] %v1859_v2  ;;  %v1857_v7 = vadd.f32 %v2290_v30, %v1842_v53  ;;  %v1889_v24 = vmul.f32 %v1859_v2, %v1859_v2 }
 0x177   : > { %1861 = vst [vmem:[%s3330_s16 + $0x8] sm:$0xff] %v1853_v9  ;;  %v1868_v5 = vadd.f32 %v1853_v9, %v1852_v42  ;;  %v1883_v13 = vmul.f32 %v1853_v9, %v1853_v9 }
 0x178   : > { %1865 = vst [vmem:[%s3330_s16 + $0x28] sm:$0xff] %v1857_v7  ;;  %v1887_v44 = vmul.f32 %v1857_v7, %v1857_v7 }
 0x179   : > { %v1869_v11 = vadd.f32 %v1868_v5, %v1854_v8  ;;  %v1890_v49 = vadd.f32 %v1883_v13, %v1882_v3 }
 0x17b   : > { %v1891_v17 = vadd.f32 %v1890_v49, %v1884_v21  ;;  %v1870_v14 = vadd.f32 %v1869_v11, %v1855_v19 }
 0x17d   : > { %v1871_v32 = vadd.f32 %v1870_v14, %v1856_v47  ;;  %v1892_v33 = vadd.f32 %v1891_v17, %v1885_v23 }
 0x17f   : > { %v1872_v40 = vadd.f32 %v1871_v32, %v1857_v7  ;;  %v1893_v22 = vadd.f32 %v1892_v33, %v1886_v15 }
 0x181   : > { %v1873_v26 = vadd.f32 %v1872_v40, %v1858_v18  ;;  %v1894_v39 = vadd.f32 %v1893_v22, %v1887_v44 }
 0x183   : > { %v1874_v50 = vadd.f32 %v1873_v26, %v1859_v2  ;;  %v1895_v51 = vadd.f32 %v1894_v39, %v1888_v45 }
 0x185   : > { %v1875_v4 = vrot.slane %v1874_v50, 4  ;;  %v1896_v41 = vadd.f32 %v1895_v51, %v1889_v24 }
 0x187   : > { %v1876_v25 = vadd.f32 %v1875_v4, %v1874_v50  ;;  %v1897_v57 = vrot.slane %v1896_v41, 4 }
 0x189   : > { %v1877_v56 = vrot.slane %v1876_v25, 2  ;;  %v1898_v16 = vadd.f32 %v1897_v57, %v1896_v41 }
 0x18b   : > { %v1878_v31 = vadd.f32 %v1877_v56, %v1876_v25  ;;  %v1899_v35 = vrot.slane %v1898_v16, 2 }
 0x18d   : > { %v1879_v30 = vrot.slane %v1878_v31, 1  ;;  %v1900_v55 = vadd.f32 %v1899_v35, %v1898_v16 }
 0x18f   : > { %v1880_v34 = vadd.f32 %v1879_v30, %v1878_v31  ;;  %v1901_v58 = vrot.slane %v1900_v55, 1 }
 0x191   : > { %1881 = vst [vmem:[%s238_s20] sm:$0x1] %v1880_v34  ;;  %v1902_v62 = vadd.f32 %v1901_v58, %v1900_v55 }
 0x193   : > { %1903 = vst [vmem:[%s241_s24] sm:$0x1] %v1902_v62 }
 0x194 PF: > { %s16_s18 = sadd.s32 1, %s2722_s18  }
 0x195   : > { %p13_p4 = scmp.ge.s32.totalorder %s16_s18, 4  }
 0x197   :  { %15 = sbr.rel (!%p13_p4) target bundleno = 1 (0x1), region = 94 }

</bundles_post_ra>
